<compile_context>
chip_gen: v5e
topology: v5e:2x2
jax: 0.10.0
libtpu: 0.0.40
codegen_flags: <defaults>
</compile_context>

<pallas_src>
import functools

import jax
import jax.numpy as jnp
from jax.experimental import pallas as pl
from jax.experimental.pallas import tpu as pltpu

LANE = 128            # TPU lane width; feature dims padded to multiples of this
MAX_TILE = 512        # max row-tile (measured ~85% of HBM roofline; VMEM use < 2 MB/call)
NEG_SLOPE = 0.01      # PyTorch nn.LeakyReLU default


def _round_up(v, m):
    return (v + m - 1) // m * m


def _pad2d(a, rows, cols):
    return jnp.pad(a, ((0, rows - a.shape[0]), (0, cols - a.shape[1])))


def _pad_linear(w, b):
    """Zero-pad [K,N] weight / [N] bias to lane-aligned [Kp,Np] / [1,Np] (numerically exact)."""
    kp = _round_up(w.shape[0], LANE)
    np_ = _round_up(w.shape[1], LANE)
    return _pad2d(w, kp, np_), jnp.pad(b, (0, np_ - b.shape[0])).reshape(1, np_)


def _tile_and_pad(n_rows, max_tile=MAX_TILE):
    """Pick a row tile (multiple of 128, <= max_tile) and the padded row count it divides.
    Keeps >= 2 grid steps whenever padded rows >= 256 so both v7x TensorCores get work."""
    n_pad = _round_up(max(n_rows, 1), LANE)
    n_tiles = -(-n_pad // max_tile)
    if n_pad >= 2 * LANE:
        n_tiles = max(n_tiles, 2)
    tile = _round_up(-(-n_pad // n_tiles), LANE)
    return tile, tile * n_tiles


def _full(arr):
    return pl.BlockSpec(arr.shape, lambda i: (0, 0))


# ----------------------------------------------------------------------------------------------
# Kernel 1: plain linear  y = x @ W + b   (TEECNet.fc1 / fc_out) — bf16 operands, f32 accumulate
# ----------------------------------------------------------------------------------------------
def _linear_kernel(x_ref, w_ref, b_ref, o_ref):
    x = x_ref[...].astype(jnp.bfloat16)
    y = jnp.dot(x, w_ref[...], preferred_element_type=jnp.float32) + b_ref[...]
    o_ref[...] = y.astype(o_ref.dtype)


def linear_pallas(x, w, b, tile_m):
    M, K = x.shape
    N = w.shape[1]
    return pl.pallas_call(
        _linear_kernel,
        out_shape=jax.ShapeDtypeStruct((M, N), jnp.float32),
        grid=(M // tile_m,),
        in_specs=[
            pl.BlockSpec((tile_m, K), lambda i: (i, 0)),
            pl.BlockSpec((K, N), lambda i: (0, 0)),
            pl.BlockSpec((1, N), lambda i: (0, 0)),
        ],
        out_specs=pl.BlockSpec((tile_m, N), lambda i: (i, 0)),
        compiler_params=pltpu.CompilerParams(dimension_semantics=("parallel",)),
        cost_estimate=pl.CostEstimate(
            flops=2 * M * K * N, transcendentals=0,
            bytes_accessed=M * K * x.dtype.itemsize + 2 * K * N + 4 * M * N),
    )(x, w, b)


# ----------------------------------------------------------------------------------------------
# Kernel 2: fused per-node pair of linears for one KernelConv layer — ONE [K,2N] matmul:
#   [x_lin | root] = x @ [W_lin | root_param] + [b_lin | bias]
#   x_lin is written as bf16 (feeds the gather + bf16 edge matmuls), root stays f32.
# ----------------------------------------------------------------------------------------------
def _node_kernel(x_ref, w_ref, b_ref, xl_ref, rt_ref):
    x = x_ref[...].astype(jnp.bfloat16)
    y = jnp.dot(x, w_ref[...], preferred_element_type=jnp.float32) + b_ref[...]
    n = xl_ref.shape[-1]                      # lane-aligned split (128-lane boundary)
    xl_ref[...] = y[:, :n].astype(xl_ref.dtype)
    rt_ref[...] = y[:, n:].astype(rt_ref.dtype)


def node_pallas(h, w_cat, b_cat, tile_m):
    M, K = h.shape
    N2 = w_cat.shape[1]
    N = N2 // 2
    return pl.pallas_call(
        _node_kernel,
        out_shape=(jax.ShapeDtypeStruct((M, N), jnp.bfloat16),
                   jax.ShapeDtypeStruct((M, N), jnp.float32)),
        grid=(M // tile_m,),
        in_specs=[
            pl.BlockSpec((tile_m, K), lambda i: (i, 0)),
            pl.BlockSpec((K, N2), lambda i: (0, 0)),
            pl.BlockSpec((1, N2), lambda i: (0, 0)),
        ],
        out_specs=(pl.BlockSpec((tile_m, N), lambda i: (i, 0)),
                   pl.BlockSpec((tile_m, N), lambda i: (i, 0))),
        compiler_params=pltpu.CompilerParams(dimension_semantics=("parallel",)),
        cost_estimate=pl.CostEstimate(
            flops=2 * M * K * N2, transcendentals=0,
            bytes_accessed=4 * M * K + 2 * K * N2 + 2 * M * N + 4 * M * N),
    )(h, w_cat, b_cat)


# ----------------------------------------------------------------------------------------------
# Kernel 3: operator_kernel MLP (DenseNet) on edge_attr -> w_op, run ONCE (hoisted out of the loop).
#   All 4 Linear(+LeakyReLU) layers back-to-back in VMEM; output bf16 [E, width^2 padded].
# ----------------------------------------------------------------------------------------------
def _wop_kernel(ea_ref, w1_ref, b1_ref, w2_ref, b2_ref, w3_ref, b3_ref, w4_ref, b4_ref, o_ref):
    def leaky(v):
        return jnp.where(v >= 0.0, v, NEG_SLOPE * v)

    h = leaky(jnp.dot(ea_ref[...], w1_ref[...], preferred_element_type=jnp.float32) + b1_ref[...])
    h = leaky(jnp.dot(h.astype(jnp.bfloat16), w2_ref[...],
                      preferred_element_type=jnp.float32) + b2_ref[...])
    h = leaky(jnp.dot(h.astype(jnp.bfloat16), w3_ref[...],
                      preferred_element_type=jnp.float32) + b3_ref[...])
    w_op = jnp.dot(h.astype(jnp.bfloat16), w4_ref[...],
                   preferred_element_type=jnp.float32) + b4_ref[...]
    o_ref[...] = w_op.astype(o_ref.dtype)


def wop_pallas(ea, mlp, tile_e):
    E, A = ea.shape
    (w1, b1), (w2, b2), (w3, b3), (w4, b4) = mlp
    WW = w4.shape[1]
    flops = 2 * E * (A * w1.shape[1] + w2.shape[0] * w2.shape[1]
                     + w3.shape[0] * w3.shape[1] + w4.shape[0] * WW)
    return pl.pallas_call(
        _wop_kernel,
        out_shape=jax.ShapeDtypeStruct((E, WW), jnp.bfloat16),
        grid=(E // tile_e,),
        in_specs=[pl.BlockSpec((tile_e, A), lambda i: (i, 0)),
                  _full(w1), _full(b1), _full(w2), _full(b2),
                  _full(w3), _full(b3), _full(w4), _full(b4)],
        out_specs=pl.BlockSpec((tile_e, WW), lambda i: (i, 0)),
        compiler_params=pltpu.CompilerParams(dimension_semantics=("parallel",)),
        cost_estimate=pl.CostEstimate(
            flops=flops, transcendentals=0, bytes_accessed=E * (2 * A + 2 * WW)),
    )(ea, w1, b1, w2, b2, w3, b3, w4, b4)


# ----------------------------------------------------------------------------------------------
# Kernel 4: per-layer edge operator application (KernelConv.message with precomputed w_op):
#   msg = ((x_src @ R) * w_op) @ S   with constant 0/1 matrices R,S -> pure MXU work.
# ----------------------------------------------------------------------------------------------
def _edge_apply_kernel(xs_ref, wop_ref, r_ref, s_ref, o_ref):
    x_exp = jnp.dot(xs_ref[...], r_ref[...], preferred_element_type=jnp.float32)   # exact copy/expand
    prod = (x_exp * wop_ref[...].astype(jnp.float32)).astype(jnp.bfloat16)
    o_ref[...] = jnp.dot(prod, s_ref[...], preferred_element_type=jnp.float32).astype(o_ref.dtype)


def edge_apply_pallas(x_src, w_op, r_mat, s_mat, tile_e):
    E, WP = x_src.shape
    WW = w_op.shape[1]
    return pl.pallas_call(
        _edge_apply_kernel,
        out_shape=jax.ShapeDtypeStruct((E, WP), jnp.float32),
        grid=(E // tile_e,),
        in_specs=[
            pl.BlockSpec((tile_e, WP), lambda i: (i, 0)),
            pl.BlockSpec((tile_e, WW), lambda i: (i, 0)),
            _full(r_mat), _full(s_mat),
        ],
        out_specs=pl.BlockSpec((tile_e, WP), lambda i: (i, 0)),
        compiler_params=pltpu.CompilerParams(dimension_semantics=("parallel",)),
        cost_estimate=pl.CostEstimate(
            flops=4 * E * WP * WW + E * WW, transcendentals=0,
            bytes_accessed=E * (2 * WP + 2 * WW + 4 * WP)),
    )(x_src, w_op, r_mat, s_mat)


# ----------------------------------------------------------------------------------------------
# Parameters (logical f32 + lane-padded bf16 weights / f32 biases)
# ----------------------------------------------------------------------------------------------
def init_teecnet_params(key, in_channels, width, out_channels, in_edge=1):
    """Deterministic logical params; uniform(+-1/sqrt(fan_in)) a la PyTorch defaults."""
    def lin(k, fan_in, fan_out):
        kw, kb = jax.random.split(k)
        bound = 1.0 / jnp.sqrt(jnp.float32(fan_in))
        w = jax.random.uniform(kw, (fan_in, fan_out), jnp.float32, -bound, bound)
        b = jax.random.uniform(kb, (fan_out,), jnp.float32, -bound, bound)
        return w, b

    keys = jax.random.split(key, 8)
    mlp_dims = [in_edge, 32, 64, 128, width * width]          # operator_kernel DenseNet
    return dict(
        fc1=lin(keys[0], in_channels, width),
        lin=lin(keys[1], width, width),
        root=lin(keys[2], width, width),                      # root_param / bias
        mlp=[lin(keys[3 + j], mlp_dims[j], mlp_dims[j + 1]) for j in range(4)],
        out=lin(keys[7], width, out_channels),
    )


def pad_teecnet_params(lp, width):
    assert width <= LANE
    ww = width * width
    ww_p = _round_up(ww, LANE)
    wp = _round_up(width, LANE)

    fc1_w, fc1_b = _pad_linear(*lp["fc1"])
    lin_w, lin_b = _pad_linear(*lp["lin"])
    root_w, root_b = _pad_linear(*lp["root"])
    out_w, out_b = _pad_linear(*lp["out"])

    p = dict(
        fc1_w=fc1_w.astype(jnp.bfloat16), fc1_b=fc1_b,
        # KernelConv.linear and root_param concatenated -> one [K, 2N] MXU op per node tile
        lr_w=jnp.concatenate([lin_w, root_w], axis=1).astype(jnp.bfloat16),
        lr_b=jnp.concatenate([lin_b, root_b], axis=1),
        out_w=out_w.astype(jnp.bfloat16), out_b=out_b,
        mlp=[(pw.astype(jnp.bfloat16), pb)
             for (pw, pb) in (_pad_linear(w, b) for (w, b) in lp["mlp"])],
    )
    # Constant 0/1 "expand" / "reduce" matrices implementing the per-edge (width x width) matmul.
    k = jnp.arange(wp)
    f = jnp.arange(ww_p)
    o = jnp.arange(wp)
    r = (f[None, :] // width == k[:, None]) & (f[None, :] < ww) & (k[:, None] < width)
    s = (f[:, None] % width == o[None, :]) & (f[:, None] < ww) & (o[None, :] < width)
    p["R"] = r.astype(jnp.bfloat16)
    p["S"] = s.astype(jnp.bfloat16)
    return p


# ----------------------------------------------------------------------------------------------
# Full TEECNet forward (Pallas kernels + plain-JAX gather/scatter glue)
# ----------------------------------------------------------------------------------------------
@functools.partial(jax.jit, static_argnames=("num_layers", "out_channels"))
def teecnet_forward_pallas(x, src, dst, edge_attr, p, *, num_layers, out_channels):
    n_nodes = x.shape[0]
    n_edges = src.shape[0]
    tile_m, n_pad = _tile_and_pad(n_nodes)
    tile_e, e_pad = _tile_and_pad(n_edges)

    x_p = _pad2d(x.astype(jnp.bfloat16), n_pad, p["fc1_w"].shape[0])
    ea_p = _pad2d(edge_attr.astype(jnp.bfloat16), e_pad, p["mlp"][0][0].shape[0])

    # mean-aggregation normalisation (in-degree, clamped to 1), fixed across layers
    deg = jax.ops.segment_sum(jnp.ones((n_edges,), jnp.float32), dst, num_segments=n_pad)
    inv_deg = (1.0 / jnp.maximum(deg, 1.0))[:, None]

    # operator_kernel MLP depends only on edge_attr -> hoisted out of the layer loop (run once)
    w_op = wop_pallas(ea_p, p["mlp"], tile_e)                          # [e_pad, ww_p] bf16

    h = linear_pallas(x_p, p["fc1_w"], p["fc1_b"], tile_m)             # fc1, f32 [n_pad, 128]

    for _ in range(num_layers):                                        # KernelConv x num_layers
        x_lin, root_term = node_pallas(h, p["lr_w"], p["lr_b"], tile_m)
        # TODO(synk): gather x_lin[src] inside the edge kernel (scalar-prefetch src + VMEM-resident
        # x_lin) to remove this XLA gather; kept in XLA (bf16 to halve its traffic) for robustness.
        x_src = jnp.pad(x_lin[src], ((0, e_pad - n_edges), (0, 0)))
        msgs = edge_apply_pallas(x_src, w_op, p["R"], p["S"], tile_e)
        # TODO(synk): PyG aggr='mean' is a data-dependent scatter; kept in plain JAX (segment_sum).
        aggr = jax.ops.segment_sum(msgs[:n_edges], dst, num_segments=n_pad) * inv_deg
        h = aggr + root_term                                           # KernelConv.update

    out = linear_pallas(h, p["out_w"], p["out_b"], tile_m)             # fc_out
    return out[:n_nodes, :out_channels]


# ----------------------------------------------------------------------------------------------
# Plain-JAX f32 (HIGHEST precision) reference for correctness check
# ----------------------------------------------------------------------------------------------
def teecnet_reference(x, src, dst, edge_attr, lp, *, num_layers, width):
    hi = jax.lax.Precision.HIGHEST
    n_nodes = x.shape[0]
    n_edges = src.shape[0]

    def leaky(v):
        return jnp.where(v >= 0.0, v, NEG_SLOPE * v)

    fc1_w, fc1_b = lp["fc1"]
    lin_w, lin_b = lp["lin"]
    root_w, root_b = lp["root"]
    out_w, out_b = lp["out"]

    h = jnp.dot(x, fc1_w, precision=hi) + fc1_b

    e = edge_attr
    for j, (w, b) in enumerate(lp["mlp"]):
        e = jnp.dot(e, w, precision=hi) + b
        if j != len(lp["mlp"]) - 1:
            e = leaky(e)
    w_op = e.reshape(n_edges, width, width)

    deg = jax.ops.segment_sum(jnp.ones((n_edges,), jnp.float32), dst, num_segments=n_nodes)
    inv_deg = (1.0 / jnp.maximum(deg, 1.0))[:, None]

    for _ in range(num_layers):
        x_lin = jnp.dot(h, lin_w, precision=hi) + lin_b
        msg = jnp.einsum("ek,eko->eo", x_lin[src], w_op, precision=hi)
        aggr = jax.ops.segment_sum(msg, dst, num_segments=n_nodes) * inv_deg
        h = aggr + jnp.dot(h, root_w, precision=hi) + root_b

    return jnp.dot(h, out_w, precision=hi) + out_b


if __name__ == "__main__":
    key = jax.random.PRNGKey(0)

    in_channels, width, out_channels = 3, 16, 2
    num_layers = 4                       # TEECNet default
    n_nodes, n_edges = 64, 256

    kx, ke, ka, kp = jax.random.split(key, 4)
    x = jax.random.normal(kx, (n_nodes, in_channels), jnp.float32)
    edge_index = jax.random.randint(ke, (2, n_edges), 0, n_nodes, dtype=jnp.int32)
    edge_attr = jax.random.normal(ka, (n_edges, 1), jnp.float32)
    src, dst = edge_index[0], edge_index[1]

    lp = init_teecnet_params(kp, in_channels, width, out_channels, in_edge=1)
    pp = pad_teecnet_params(lp, width)

    out = teecnet_forward_pallas(x, src, dst, edge_attr, pp,
                                 num_layers=num_layers, out_channels=out_channels)
    out = jax.block_until_ready(out)

    ref = teecnet_reference(x, src, dst, edge_attr, lp, num_layers=num_layers, width=width)
    assert out.shape == (n_nodes, out_channels)
    # bf16 matmul operands (f32 accumulation) vs. f32 HIGHEST reference -> relative max-error check
    rel_err = float(jnp.max(jnp.abs(out - ref)) / (jnp.max(jnp.abs(ref)) + 1e-8))
    assert rel_err < 5e-2, rel_err

    print("KERNEL_OK")
</pallas_src>

<mosaic_0001>
module attributes {stable_mosaic.version = 11 : i64} {
  func.func @_linear_kernel(%arg0: i32, %arg1: memref<128x128xbf16, #tpu.memory_space<vmem>>, %arg2: memref<128x128xbf16, #tpu.memory_space<vmem>>, %arg3: memref<1x128xf32, #tpu.memory_space<vmem>>, %arg4: memref<128x128xf32, #tpu.memory_space<vmem>>) attributes {dimension_semantics = [#tpu.dimension_semantics<parallel>], iteration_bounds = array<i64: 1>, scalar_prefetch = 0 : i64, scratch_operands = 0 : i64, tpu.core_type = #tpu.core_type<tc>, window_params = [{transform_indices = @transform_0, window_bounds = array<i64: 128, 128>}, {pipeline_mode = #tpu.pipeline_mode<synchronous>, transform_indices = @transform_1, window_bounds = array<i64: 128, 128>}, {pipeline_mode = #tpu.pipeline_mode<synchronous>, transform_indices = @transform_2, window_bounds = array<i64: 1, 128>}, {transform_indices = @transform_3, window_bounds = array<i64: 128, 128>}]} {
    %c0 = arith.constant 0 : index
    %c0_0 = arith.constant 0 : index
    %0 = vector.load %arg1[%c0, %c0_0] : memref<128x128xbf16, #tpu.memory_space<vmem>>, vector<128x128xbf16>
    %c0_1 = arith.constant 0 : index
    %c0_2 = arith.constant 0 : index
    %1 = vector.load %arg2[%c0_1, %c0_2] : memref<128x128xbf16, #tpu.memory_space<vmem>>, vector<128x128xbf16>
    %cst = arith.constant dense<0.000000e+00> : vector<128x128xf32>
    %2 = tpu.matmul %0, %1, %cst {dimension_numbers = #tpu.dot_dimension_numbers<[1], [0], [0], [1], [0, 0, 1, 1], [], []>} : vector<128x128xbf16>, vector<128x128xbf16>, vector<128x128xf32> -> vector<128x128xf32>
    %c0_3 = arith.constant 0 : index
    %c0_4 = arith.constant 0 : index
    %3 = vector.load %arg3[%c0_3, %c0_4] : memref<1x128xf32, #tpu.memory_space<vmem>>, vector<1x128xf32>
    %4 = vector.broadcast %3 : vector<1x128xf32> to vector<128x128xf32>
    %5 = arith.addf %2, %4 : vector<128x128xf32>
    %c0_5 = arith.constant 0 : index
    %c0_6 = arith.constant 0 : index
    %6 = vector.load %arg4[%c0_5, %c0_6] : memref<128x128xf32, #tpu.memory_space<vmem>>, vector<128x128xf32>
    tpu.vector_store %arg4[%c0_5, %c0_6], %5 {strides = array<i32>} : memref<128x128xf32, #tpu.memory_space<vmem>>, vector<128x128xf32>,
    return
  }
  func.func @transform_0(%arg0: i32) -> (i32, i32) {
    %c0_i32 = arith.constant 0 : i32
    %c0_i32_0 = arith.constant 0 : i32
    return %arg0, %c0_i32 : i32, i32
  }
  func.func @transform_1(%arg0: i32) -> (i32, i32) {
    %c0_i32 = arith.constant 0 : i32
    %c0_i32_0 = arith.constant 0 : i32
    %c0_i32_1 = arith.constant 0 : i32
    return %c0_i32, %c0_i32_0 : i32, i32
  }
  func.func @transform_2(%arg0: i32) -> (i32, i32) {
    %c0_i32 = arith.constant 0 : i32
    %c0_i32_0 = arith.constant 0 : i32
    %c0_i32_1 = arith.constant 0 : i32
    return %c0_i32, %c0_i32_0 : i32, i32
  }
  func.func @transform_3(%arg0: i32) -> (i32, i32) {
    %c0_i32 = arith.constant 0 : i32
    %c0_i32_0 = arith.constant 0 : i32
    return %arg0, %c0_i32 : i32, i32
  }
}

module attributes {stable_mosaic.version = 11 : i64} {
  func.func @_node_kernel(%arg0: i32, %arg1: memref<128x128xf32, #tpu.memory_space<vmem>>, %arg2: memref<128x256xbf16, #tpu.memory_space<vmem>>, %arg3: memref<1x256xf32, #tpu.memory_space<vmem>>, %arg4: memref<128x128xbf16, #tpu.memory_space<vmem>>, %arg5: memref<128x128xf32, #tpu.memory_space<vmem>>) attributes {dimension_semantics = [#tpu.dimension_semantics<parallel>], iteration_bounds = array<i64: 1>, scalar_prefetch = 0 : i64, scratch_operands = 0 : i64, tpu.core_type = #tpu.core_type<tc>, window_params = [{transform_indices = @transform_0, window_bounds = array<i64: 128, 128>}, {pipeline_mode = #tpu.pipeline_mode<synchronous>, transform_indices = @transform_1, window_bounds = array<i64: 128, 256>}, {pipeline_mode = #tpu.pipeline_mode<synchronous>, transform_indices = @transform_2, window_bounds = array<i64: 1, 256>}, {transform_indices = @transform_3, window_bounds = array<i64: 128, 128>}, {transform_indices = @transform_4, window_bounds = array<i64: 128, 128>}]} {
    %c0 = arith.constant 0 : index
    %c0_0 = arith.constant 0 : index
    %0 = vector.load %arg1[%c0, %c0_0] : memref<128x128xf32, #tpu.memory_space<vmem>>, vector<128x128xf32>
    %1 = arith.truncf %0 : vector<128x128xf32> to vector<128x128xbf16>
    %c0_1 = arith.constant 0 : index
    %c0_2 = arith.constant 0 : index
    %2 = vector.load %arg2[%c0_1, %c0_2] : memref<128x256xbf16, #tpu.memory_space<vmem>>, vector<128x256xbf16>
    %cst = arith.constant dense<0.000000e+00> : vector<128x256xf32>
    %3 = tpu.matmul %1, %2, %cst {dimension_numbers = #tpu.dot_dimension_numbers<[1], [0], [0], [1], [0, 0, 1, 1], [], []>} : vector<128x128xbf16>, vector<128x256xbf16>, vector<128x256xf32> -> vector<128x256xf32>
    %c0_3 = arith.constant 0 : index
    %c0_4 = arith.constant 0 : index
    %4 = vector.load %arg3[%c0_3, %c0_4] : memref<1x256xf32, #tpu.memory_space<vmem>>, vector<1x256xf32>
    %5 = vector.broadcast %4 : vector<1x256xf32> to vector<128x256xf32>
    %6 = arith.addf %3, %5 : vector<128x256xf32>
    %7 = vector.extract_strided_slice %6 {offsets = [0, 0], sizes = [128, 128], strides = [1, 1]} : vector<128x256xf32> to vector<128x128xf32>
    %8 = arith.truncf %7 : vector<128x128xf32> to vector<128x128xbf16>
    %c0_5 = arith.constant 0 : index
    %c0_6 = arith.constant 0 : index
    %9 = vector.load %arg4[%c0_5, %c0_6] : memref<128x128xbf16, #tpu.memory_space<vmem>>, vector<128x128xbf16>
    tpu.vector_store %arg4[%c0_5, %c0_6], %8 {strides = array<i32>} : memref<128x128xbf16, #tpu.memory_space<vmem>>, vector<128x128xbf16>,
    %10 = vector.extract_strided_slice %6 {offsets = [0, 128], sizes = [128, 128], strides = [1, 1]} : vector<128x256xf32> to vector<128x128xf32>
    %c0_7 = arith.constant 0 : index
    %c0_8 = arith.constant 0 : index
    %11 = vector.load %arg5[%c0_7, %c0_8] : memref<128x128xf32, #tpu.memory_space<vmem>>, vector<128x128xf32>
    tpu.vector_store %arg5[%c0_7, %c0_8], %10 {strides = array<i32>} : memref<128x128xf32, #tpu.memory_space<vmem>>, vector<128x128xf32>,
    return
  }
  func.func @transform_0(%arg0: i32) -> (i32, i32) {
    %c0_i32 = arith.constant 0 : i32
    %c0_i32_0 = arith.constant 0 : i32
    return %arg0, %c0_i32 : i32, i32
  }
  func.func @transform_1(%arg0: i32) -> (i32, i32) {
    %c0_i32 = arith.constant 0 : i32
    %c0_i32_0 = arith.constant 0 : i32
    %c0_i32_1 = arith.constant 0 : i32
    return %c0_i32, %c0_i32_0 : i32, i32
  }
  func.func @transform_2(%arg0: i32) -> (i32, i32) {
    %c0_i32 = arith.constant 0 : i32
    %c0_i32_0 = arith.constant 0 : i32
    %c0_i32_1 = arith.constant 0 : i32
    return %c0_i32, %c0_i32_0 : i32, i32
  }
  func.func @transform_3(%arg0: i32) -> (i32, i32) {
    %c0_i32 = arith.constant 0 : i32
    %c0_i32_0 = arith.constant 0 : i32
    return %arg0, %c0_i32 : i32, i32
  }
  func.func @transform_4(%arg0: i32) -> (i32, i32) {
    %c0_i32 = arith.constant 0 : i32
    %c0_i32_0 = arith.constant 0 : i32
    return %arg0, %c0_i32 : i32, i32
  }
}

module attributes {stable_mosaic.version = 11 : i64} {
  func.func @_wop_kernel(%arg0: i32, %arg1: memref<128x128xbf16, #tpu.memory_space<vmem>>, %arg2: memref<128x128xbf16, #tpu.memory_space<vmem>>, %arg3: memref<1x128xf32, #tpu.memory_space<vmem>>, %arg4: memref<128x128xbf16, #tpu.memory_space<vmem>>, %arg5: memref<1x128xf32, #tpu.memory_space<vmem>>, %arg6: memref<128x128xbf16, #tpu.memory_space<vmem>>, %arg7: memref<1x128xf32, #tpu.memory_space<vmem>>, %arg8: memref<128x256xbf16, #tpu.memory_space<vmem>>, %arg9: memref<1x256xf32, #tpu.memory_space<vmem>>, %arg10: memref<128x256xbf16, #tpu.memory_space<vmem>>) attributes {dimension_semantics = [#tpu.dimension_semantics<parallel>], iteration_bounds = array<i64: 2>, scalar_prefetch = 0 : i64, scratch_operands = 0 : i64, tpu.core_type = #tpu.core_type<tc>, window_params = [{transform_indices = @transform_0, window_bounds = array<i64: 128, 128>}, {pipeline_mode = #tpu.pipeline_mode<synchronous>, transform_indices = @transform_1, window_bounds = array<i64: 128, 128>}, {pipeline_mode = #tpu.pipeline_mode<synchronous>, transform_indices = @transform_2, window_bounds = array<i64: 1, 128>}, {pipeline_mode = #tpu.pipeline_mode<synchronous>, transform_indices = @transform_3, window_bounds = array<i64: 128, 128>}, {pipeline_mode = #tpu.pipeline_mode<synchronous>, transform_indices = @transform_4, window_bounds = array<i64: 1, 128>}, {pipeline_mode = #tpu.pipeline_mode<synchronous>, transform_indices = @transform_5, window_bounds = array<i64: 128, 128>}, {pipeline_mode = #tpu.pipeline_mode<synchronous>, transform_indices = @transform_6, window_bounds = array<i64: 1, 128>}, {pipeline_mode = #tpu.pipeline_mode<synchronous>, transform_indices = @transform_7, window_bounds = array<i64: 128, 256>}, {pipeline_mode = #tpu.pipeline_mode<synchronous>, transform_indices = @transform_8, window_bounds = array<i64: 1, 256>}, {transform_indices = @transform_9, window_bounds = array<i64: 128, 256>}]} {
    %c0 = arith.constant 0 : index
    %c0_0 = arith.constant 0 : index
    %0 = vector.load %arg1[%c0, %c0_0] : memref<128x128xbf16, #tpu.memory_space<vmem>>, vector<128x128xbf16>
    %c0_1 = arith.constant 0 : index
    %c0_2 = arith.constant 0 : index
    %1 = vector.load %arg2[%c0_1, %c0_2] : memref<128x128xbf16, #tpu.memory_space<vmem>>, vector<128x128xbf16>
    %cst = arith.constant dense<0.000000e+00> : vector<128x128xf32>
    %2 = tpu.matmul %0, %1, %cst {dimension_numbers = #tpu.dot_dimension_numbers<[1], [0], [0], [1], [0, 0, 1, 1], [], []>} : vector<128x128xbf16>, vector<128x128xbf16>, vector<128x128xf32> -> vector<128x128xf32>
    %c0_3 = arith.constant 0 : index
    %c0_4 = arith.constant 0 : index
    %3 = vector.load %arg3[%c0_3, %c0_4] : memref<1x128xf32, #tpu.memory_space<vmem>>, vector<1x128xf32>
    %4 = vector.broadcast %3 : vector<1x128xf32> to vector<128x128xf32>
    %5 = arith.addf %2, %4 : vector<128x128xf32>
    %cst_5 = arith.constant 0.000000e+00 : f32
    %6 = vector.broadcast %cst_5 : f32 to vector<128x128xf32>
    %7 = arith.cmpf oge, %5, %6 : vector<128x128xf32>
    %cst_6 = arith.constant 0.00999999977 : f32
    %8 = vector.broadcast %cst_6 : f32 to vector<128x128xf32>
    %9 = arith.mulf %8, %5 : vector<128x128xf32>
    %10 = arith.select %7, %5, %9 : vector<128x128xi1>, vector<128x128xf32>
    %11 = arith.truncf %10 : vector<128x128xf32> to vector<128x128xbf16>
    %c0_7 = arith.constant 0 : index
    %c0_8 = arith.constant 0 : index
    %12 = vector.load %arg4[%c0_7, %c0_8] : memref<128x128xbf16, #tpu.memory_space<vmem>>, vector<128x128xbf16>
    %cst_9 = arith.constant dense<0.000000e+00> : vector<128x128xf32>
    %13 = tpu.matmul %11, %12, %cst_9 {dimension_numbers = #tpu.dot_dimension_numbers<[1], [0], [0], [1], [0, 0, 1, 1], [], []>} : vector<128x128xbf16>, vector<128x128xbf16>, vector<128x128xf32> -> vector<128x128xf32>
    %c0_10 = arith.constant 0 : index
    %c0_11 = arith.constant 0 : index
    %14 = vector.load %arg5[%c0_10, %c0_11] : memref<1x128xf32, #tpu.memory_space<vmem>>, vector<1x128xf32>
    %15 = vector.broadcast %14 : vector<1x128xf32> to vector<128x128xf32>
    %16 = arith.addf %13, %15 : vector<128x128xf32>
    %cst_12 = arith.constant 0.000000e+00 : f32
    %17 = vector.broadcast %cst_12 : f32 to vector<128x128xf32>
    %18 = arith.cmpf oge, %16, %17 : vector<128x128xf32>
    %cst_13 = arith.constant 0.00999999977 : f32
    %19 = vector.broadcast %cst_13 : f32 to vector<128x128xf32>
    %20 = arith.mulf %19, %16 : vector<128x128xf32>
    %21 = arith.select %18, %16, %20 : vector<128x128xi1>, vector<128x128xf32>
    %22 = arith.truncf %21 : vector<128x128xf32> to vector<128x128xbf16>
    %c0_14 = arith.constant 0 : index
    %c0_15 = arith.constant 0 : index
    %23 = vector.load %arg6[%c0_14, %c0_15] : memref<128x128xbf16, #tpu.memory_space<vmem>>, vector<128x128xbf16>
    %cst_16 = arith.constant dense<0.000000e+00> : vector<128x128xf32>
    %24 = tpu.matmul %22, %23, %cst_16 {dimension_numbers = #tpu.dot_dimension_numbers<[1], [0], [0], [1], [0, 0, 1, 1], [], []>} : vector<128x128xbf16>, vector<128x128xbf16>, vector<128x128xf32> -> vector<128x128xf32>
    %c0_17 = arith.constant 0 : index
    %c0_18 = arith.constant 0 : index
    %25 = vector.load %arg7[%c0_17, %c0_18] : memref<1x128xf32, #tpu.memory_space<vmem>>, vector<1x128xf32>
    %26 = vector.broadcast %25 : vector<1x128xf32> to vector<128x128xf32>
    %27 = arith.addf %24, %26 : vector<128x128xf32>
    %cst_19 = arith.constant 0.000000e+00 : f32
    %28 = vector.broadcast %cst_19 : f32 to vector<128x128xf32>
    %29 = arith.cmpf oge, %27, %28 : vector<128x128xf32>
    %cst_20 = arith.constant 0.00999999977 : f32
    %30 = vector.broadcast %cst_20 : f32 to vector<128x128xf32>
    %31 = arith.mulf %30, %27 : vector<128x128xf32>
    %32 = arith.select %29, %27, %31 : vector<128x128xi1>, vector<128x128xf32>
    %33 = arith.truncf %32 : vector<128x128xf32> to vector<128x128xbf16>
    %c0_21 = arith.constant 0 : index
    %c0_22 = arith.constant 0 : index
    %34 = vector.load %arg8[%c0_21, %c0_22] : memref<128x256xbf16, #tpu.memory_space<vmem>>, vector<128x256xbf16>
    %cst_23 = arith.constant dense<0.000000e+00> : vector<128x256xf32>
    %35 = tpu.matmul %33, %34, %cst_23 {dimension_numbers = #tpu.dot_dimension_numbers<[1], [0], [0], [1], [0, 0, 1, 1], [], []>} : vector<128x128xbf16>, vector<128x256xbf16>, vector<128x256xf32> -> vector<128x256xf32>
    %c0_24 = arith.constant 0 : index
    %c0_25 = arith.constant 0 : index
    %36 = vector.load %arg9[%c0_24, %c0_25] : memref<1x256xf32, #tpu.memory_space<vmem>>, vector<1x256xf32>
    %37 = vector.broadcast %36 : vector<1x256xf32> to vector<128x256xf32>
    %38 = arith.addf %35, %37 : vector<128x256xf32>
    %39 = arith.truncf %38 : vector<128x256xf32> to vector<128x256xbf16>
    %c0_26 = arith.constant 0 : index
    %c0_27 = arith.constant 0 : index
    %40 = vector.load %arg10[%c0_26, %c0_27] : memref<128x256xbf16, #tpu.memory_space<vmem>>, vector<128x256xbf16>
    tpu.vector_store %arg10[%c0_26, %c0_27], %39 {strides = array<i32>} : memref<128x256xbf16, #tpu.memory_space<vmem>>, vector<128x256xbf16>,
    return
  }
  func.func @transform_0(%arg0: i32) -> (i32, i32) {
    %c0_i32 = arith.constant 0 : i32
    %c0_i32_0 = arith.constant 0 : i32
    return %arg0, %c0_i32 : i32, i32
  }
  func.func @transform_1(%arg0: i32) -> (i32, i32) {
    %c0_i32 = arith.constant 0 : i32
    %c0_i32_0 = arith.constant 0 : i32
    %c0_i32_1 = arith.constant 0 : i32
    return %c0_i32, %c0_i32_0 : i32, i32
  }
  func.func @transform_2(%arg0: i32) -> (i32, i32) {
    %c0_i32 = arith.constant 0 : i32
    %c0_i32_0 = arith.constant 0 : i32
    %c0_i32_1 = arith.constant 0 : i32
    return %c0_i32, %c0_i32_0 : i32, i32
  }
  func.func @transform_3(%arg0: i32) -> (i32, i32) {
    %c0_i32 = arith.constant 0 : i32
    %c0_i32_0 = arith.constant 0 : i32
    %c0_i32_1 = arith.constant 0 : i32
    return %c0_i32, %c0_i32_0 : i32, i32
  }
  func.func @transform_4(%arg0: i32) -> (i32, i32) {
    %c0_i32 = arith.constant 0 : i32
    %c0_i32_0 = arith.constant 0 : i32
    %c0_i32_1 = arith.constant 0 : i32
    return %c0_i32, %c0_i32_0 : i32, i32
  }
  func.func @transform_5(%arg0: i32) -> (i32, i32) {
    %c0_i32 = arith.constant 0 : i32
    %c0_i32_0 = arith.constant 0 : i32
    %c0_i32_1 = arith.constant 0 : i32
    return %c0_i32, %c0_i32_0 : i32, i32
  }
  func.func @transform_6(%arg0: i32) -> (i32, i32) {
    %c0_i32 = arith.constant 0 : i32
    %c0_i32_0 = arith.constant 0 : i32
    %c0_i32_1 = arith.constant 0 : i32
    return %c0_i32, %c0_i32_0 : i32, i32
  }
  func.func @transform_7(%arg0: i32) -> (i32, i32) {
    %c0_i32 = arith.constant 0 : i32
    %c0_i32_0 = arith.constant 0 : i32
    %c0_i32_1 = arith.constant 0 : i32
    return %c0_i32, %c0_i32_0 : i32, i32
  }
  func.func @transform_8(%arg0: i32) -> (i32, i32) {
    %c0_i32 = arith.constant 0 : i32
    %c0_i32_0 = arith.constant 0 : i32
    %c0_i32_1 = arith.constant 0 : i32
    return %c0_i32, %c0_i32_0 : i32, i32
  }
  func.func @transform_9(%arg0: i32) -> (i32, i32) {
    %c0_i32 = arith.constant 0 : i32
    %c0_i32_0 = arith.constant 0 : i32
    return %arg0, %c0_i32 : i32, i32
  }
}

module attributes {stable_mosaic.version = 11 : i64} {
  func.func @_edge_apply_kernel(%arg0: i32, %arg1: memref<128x128xbf16, #tpu.memory_space<vmem>>, %arg2: memref<128x256xbf16, #tpu.memory_space<vmem>>, %arg3: memref<128x256xbf16, #tpu.memory_space<vmem>>, %arg4: memref<256x128xbf16, #tpu.memory_space<vmem>>, %arg5: memref<128x128xf32, #tpu.memory_space<vmem>>) attributes {dimension_semantics = [#tpu.dimension_semantics<parallel>], iteration_bounds = array<i64: 2>, scalar_prefetch = 0 : i64, scratch_operands = 0 : i64, tpu.core_type = #tpu.core_type<tc>, window_params = [{transform_indices = @transform_0, window_bounds = array<i64: 128, 128>}, {transform_indices = @transform_1, window_bounds = array<i64: 128, 256>}, {pipeline_mode = #tpu.pipeline_mode<synchronous>, transform_indices = @transform_2, window_bounds = array<i64: 128, 256>}, {pipeline_mode = #tpu.pipeline_mode<synchronous>, transform_indices = @transform_3, window_bounds = array<i64: 256, 128>}, {transform_indices = @transform_4, window_bounds = array<i64: 128, 128>}]} {
    %c0 = arith.constant 0 : index
    %c0_0 = arith.constant 0 : index
    %0 = vector.load %arg1[%c0, %c0_0] : memref<128x128xbf16, #tpu.memory_space<vmem>>, vector<128x128xbf16>
    %c0_1 = arith.constant 0 : index
    %c0_2 = arith.constant 0 : index
    %1 = vector.load %arg3[%c0_1, %c0_2] : memref<128x256xbf16, #tpu.memory_space<vmem>>, vector<128x256xbf16>
    %cst = arith.constant dense<0.000000e+00> : vector<128x256xf32>
    %2 = tpu.matmul %0, %1, %cst {dimension_numbers = #tpu.dot_dimension_numbers<[1], [0], [0], [1], [0, 0, 1, 1], [], []>} : vector<128x128xbf16>, vector<128x256xbf16>, vector<128x256xf32> -> vector<128x256xf32>
    %c0_3 = arith.constant 0 : index
    %c0_4 = arith.constant 0 : index
    %3 = vector.load %arg2[%c0_3, %c0_4] : memref<128x256xbf16, #tpu.memory_space<vmem>>, vector<128x256xbf16>
    %4 = arith.extf %3 : vector<128x256xbf16> to vector<128x256xf32>
    %5 = arith.mulf %2, %4 : vector<128x256xf32>
    %6 = arith.truncf %5 : vector<128x256xf32> to vector<128x256xbf16>
    %c0_5 = arith.constant 0 : index
    %c0_6 = arith.constant 0 : index
    %7 = vector.load %arg4[%c0_5, %c0_6] : memref<256x128xbf16, #tpu.memory_space<vmem>>, vector<256x128xbf16>
    %cst_7 = arith.constant dense<0.000000e+00> : vector<128x128xf32>
    %8 = tpu.matmul %6, %7, %cst_7 {dimension_numbers = #tpu.dot_dimension_numbers<[1], [0], [0], [1], [0, 0, 1, 1], [], []>} : vector<128x256xbf16>, vector<256x128xbf16>, vector<128x128xf32> -> vector<128x128xf32>
    %c0_8 = arith.constant 0 : index
    %c0_9 = arith.constant 0 : index
    %9 = vector.load %arg5[%c0_8, %c0_9] : memref<128x128xf32, #tpu.memory_space<vmem>>, vector<128x128xf32>
    tpu.vector_store %arg5[%c0_8, %c0_9], %8 {strides = array<i32>} : memref<128x128xf32, #tpu.memory_space<vmem>>, vector<128x128xf32>,
    return
  }
  func.func @transform_0(%arg0: i32) -> (i32, i32) {
    %c0_i32 = arith.constant 0 : i32
    %c0_i32_0 = arith.constant 0 : i32
    return %arg0, %c0_i32 : i32, i32
  }
  func.func @transform_1(%arg0: i32) -> (i32, i32) {
    %c0_i32 = arith.constant 0 : i32
    %c0_i32_0 = arith.constant 0 : i32
    return %arg0, %c0_i32 : i32, i32
  }
  func.func @transform_2(%arg0: i32) -> (i32, i32) {
    %c0_i32 = arith.constant 0 : i32
    %c0_i32_0 = arith.constant 0 : i32
    %c0_i32_1 = arith.constant 0 : i32
    return %c0_i32, %c0_i32_0 : i32, i32
  }
  func.func @transform_3(%arg0: i32) -> (i32, i32) {
    %c0_i32 = arith.constant 0 : i32
    %c0_i32_0 = arith.constant 0 : i32
    %c0_i32_1 = arith.constant 0 : i32
    return %c0_i32, %c0_i32_0 : i32, i32
  }
  func.func @transform_4(%arg0: i32) -> (i32, i32) {
    %c0_i32 = arith.constant 0 : i32
    %c0_i32_0 = arith.constant 0 : i32
    return %arg0, %c0_i32 : i32, i32
  }
}

module attributes {stable_mosaic.version = 11 : i64} {
  func.func @_linear_kernel(%arg0: i32, %arg1: memref<128x128xf32, #tpu.memory_space<vmem>>, %arg2: memref<128x128xbf16, #tpu.memory_space<vmem>>, %arg3: memref<1x128xf32, #tpu.memory_space<vmem>>, %arg4: memref<128x128xf32, #tpu.memory_space<vmem>>) attributes {dimension_semantics = [#tpu.dimension_semantics<parallel>], iteration_bounds = array<i64: 1>, scalar_prefetch = 0 : i64, scratch_operands = 0 : i64, tpu.core_type = #tpu.core_type<tc>, window_params = [{transform_indices = @transform_0, window_bounds = array<i64: 128, 128>}, {pipeline_mode = #tpu.pipeline_mode<synchronous>, transform_indices = @transform_1, window_bounds = array<i64: 128, 128>}, {pipeline_mode = #tpu.pipeline_mode<synchronous>, transform_indices = @transform_2, window_bounds = array<i64: 1, 128>}, {transform_indices = @transform_3, window_bounds = array<i64: 128, 128>}]} {
    %c0 = arith.constant 0 : index
    %c0_0 = arith.constant 0 : index
    %0 = vector.load %arg1[%c0, %c0_0] : memref<128x128xf32, #tpu.memory_space<vmem>>, vector<128x128xf32>
    %1 = arith.truncf %0 : vector<128x128xf32> to vector<128x128xbf16>
    %c0_1 = arith.constant 0 : index
    %c0_2 = arith.constant 0 : index
    %2 = vector.load %arg2[%c0_1, %c0_2] : memref<128x128xbf16, #tpu.memory_space<vmem>>, vector<128x128xbf16>
    %cst = arith.constant dense<0.000000e+00> : vector<128x128xf32>
    %3 = tpu.matmul %1, %2, %cst {dimension_numbers = #tpu.dot_dimension_numbers<[1], [0], [0], [1], [0, 0, 1, 1], [], []>} : vector<128x128xbf16>, vector<128x128xbf16>, vector<128x128xf32> -> vector<128x128xf32>
    %c0_3 = arith.constant 0 : index
    %c0_4 = arith.constant 0 : index
    %4 = vector.load %arg3[%c0_3, %c0_4] : memref<1x128xf32, #tpu.memory_space<vmem>>, vector<1x128xf32>
    %5 = vector.broadcast %4 : vector<1x128xf32> to vector<128x128xf32>
    %6 = arith.addf %3, %5 : vector<128x128xf32>
    %c0_5 = arith.constant 0 : index
    %c0_6 = arith.constant 0 : index
    %7 = vector.load %arg4[%c0_5, %c0_6] : memref<128x128xf32, #tpu.memory_space<vmem>>, vector<128x128xf32>
    tpu.vector_store %arg4[%c0_5, %c0_6], %6 {strides = array<i32>} : memref<128x128xf32, #tpu.memory_space<vmem>>, vector<128x128xf32>,
    return
  }
  func.func @transform_0(%arg0: i32) -> (i32, i32) {
    %c0_i32 = arith.constant 0 : i32
    %c0_i32_0 = arith.constant 0 : i32
    return %arg0, %c0_i32 : i32, i32
  }
  func.func @transform_1(%arg0: i32) -> (i32, i32) {
    %c0_i32 = arith.constant 0 : i32
    %c0_i32_0 = arith.constant 0 : i32
    %c0_i32_1 = arith.constant 0 : i32
    return %c0_i32, %c0_i32_0 : i32, i32
  }
  func.func @transform_2(%arg0: i32) -> (i32, i32) {
    %c0_i32 = arith.constant 0 : i32
    %c0_i32_0 = arith.constant 0 : i32
    %c0_i32_1 = arith.constant 0 : i32
    return %c0_i32, %c0_i32_0 : i32, i32
  }
  func.func @transform_3(%arg0: i32) -> (i32, i32) {
    %c0_i32 = arith.constant 0 : i32
    %c0_i32_0 = arith.constant 0 : i32
    return %arg0, %c0_i32 : i32, i32
  }
}

</mosaic_0001>

<bundles_post_ra>
// kernel: teecnet_forward_pallas.12
= control target key start
LH: loop header
LB: loop body
LE: loop exit
PB: predicated region body
PF: predicated region fallthrough
CT: control target
= control target key end

     0   :  { %s439_s1 = inlined_call_operand.vmem [shape: bf16[128,128], index: 1, kind: input, shape index: {}]   ;;  %s440_s2 = inlined_call_operand.vmem [shape: f32[1,128], index: 2, kind: input, shape index: {}]   ;;  %s441_s0 = inlined_call_operand.vmem [shape: bf16[128,128], index: 0, kind: input, shape index: {}]   ;;  %s442_s3 = inlined_call_operand.vmem [shape: f32[128,128], index: 3, kind: output, shape index: {}]  }
   0x1   :  { %v294_v0 = vld [vmem:[%s439_s1 + $0x38] sm:$0xff]  ;;  %v293_v1 = vld [vmem:[%s439_s1 + $0x30] sm:$0xff]  ;;  %v292_v2 = vld [vmem:[%s439_s1 + $0x28] sm:$0xff] }
   0x2   :  { %146 = vmatpush.bf16.msra.mxu0 %v294_v0  ;;  %295 = vmatpush.bf16.msra.mxu1 %v294_v0  ;;  %v291_v3 = vld [vmem:[%s439_s1 + $0x20] sm:$0xff]  ;;  %v290_v4 = vld [vmem:[%s439_s1 + $0x18] sm:$0xff]  ;;  %v289_v5 = vld [vmem:[%s439_s1 + $0x10] sm:$0xff] }
   0x3   :  { %296 = vmatpush.bf16.msra.mxu2 %v294_v0  ;;  %297 = vmatpush.bf16.msra.mxu3 %v294_v0  ;;  %v288_v6 = vld [vmem:[%s439_s1 + $0x8] sm:$0xff]  ;;  %v287_v7 = vld [vmem:[%s439_s1] sm:$0xff]  ;;  %v281_v9 = vld [vmem:[%s441_s0 + $0x10] sm:$0xff] }
   0x4   :  { %v279_v8 = vld [vmem:[%s441_s0] sm:$0xff]  ;;  %v285_v11 = vld [vmem:[%s441_s0 + $0x30] sm:$0xff]  ;;  %v280_v12 = vld [vmem:[%s441_s0 + $0x8] sm:$0xff] }
   0x5   :  { %v283_v10 = vld [vmem:[%s441_s0 + $0x20] sm:$0xff]  ;;  %v282_v13 = vld [vmem:[%s441_s0 + $0x18] sm:$0xff]  ;;  %v284_v14 = vld [vmem:[%s441_s0 + $0x28] sm:$0xff] }
   0x6   :  { %147 = vmatpush.bf16.msra.mxu0 %v293_v1  ;;  %298 = vmatpush.bf16.msra.mxu1 %v293_v1  ;;  %v286_v15 = vld [vmem:[%s441_s0 + $0x38] sm:$0xff]  ;;  %v319_v16 = vld [vmem:[%s440_s2] ss:$0 sm:$0xff] }
   0x7   :  { %299 = vmatpush.bf16.msra.mxu2 %v293_v1  ;;  %300 = vmatpush.bf16.msra.mxu3 %v293_v1 }
   0xa   :  { %148 = vmatpush.bf16.msra.mxu0 %v292_v2  ;;  %301 = vmatpush.bf16.msra.mxu1 %v292_v2 }
   0xb   :  { %302 = vmatpush.bf16.msra.mxu2 %v292_v2  ;;  %303 = vmatpush.bf16.msra.mxu3 %v292_v2 }
   0xe   :  { %149 = vmatpush.bf16.msra.mxu0 %v291_v3  ;;  %304 = vmatpush.bf16.msra.mxu1 %v291_v3 }
   0xf   :  { %305 = vmatpush.bf16.msra.mxu2 %v291_v3  ;;  %306 = vmatpush.bf16.msra.mxu3 %v291_v3 }
  0x12   :  { %150 = vmatpush.bf16.msra.mxu0 %v290_v4  ;;  %307 = vmatpush.bf16.msra.mxu1 %v290_v4 }
  0x13   :  { %308 = vmatpush.bf16.msra.mxu2 %v290_v4  ;;  %309 = vmatpush.bf16.msra.mxu3 %v290_v4 }
  0x16   :  { %151 = vmatpush.bf16.msra.mxu0 %v289_v5  ;;  %310 = vmatpush.bf16.msra.mxu1 %v289_v5 }
  0x17   :  { %311 = vmatpush.bf16.msra.mxu2 %v289_v5  ;;  %312 = vmatpush.bf16.msra.mxu3 %v289_v5 }
  0x1a   :  { %152 = vmatpush.bf16.msra.mxu0 %v288_v6  ;;  %313 = vmatpush.bf16.msra.mxu1 %v288_v6 }
  0x1b   :  { %314 = vmatpush.bf16.msra.mxu2 %v288_v6  ;;  %315 = vmatpush.bf16.msra.mxu3 %v288_v6 }
  0x1e   :  { %153 = vmatpush.bf16.msra.mxu0 %v287_v7  ;;  %316 = vmatpush.bf16.msra.mxu1 %v287_v7 }
  0x1f   :  { %317 = vmatpush.bf16.msra.mxu2 %v287_v7  ;;  %318 = vmatpush.bf16.msra.mxu3 %v287_v7 }
  0x21   :  { %154 = vmatmul.bf16.vlgmr.msra.gmra.mxu0 %v279_v8  ;;  %164 = vmatmul.bf16.vlgmr.msra.gmra.mxu1 %v281_v9 }
  0x22   :  { %174 = vmatmul.bf16.vlgmr.msra.gmra.mxu2 %v283_v10  ;;  %184 = vmatmul.bf16.vlgmr.msra.gmra.mxu3 %v285_v11 }
  0x31   :  { %159 = vmatmul.bf16.gmra.mxu0 %v280_v12  ;;  %169 = vmatmul.bf16.gmra.mxu1 %v282_v13 }
  0x32   :  { %179 = vmatmul.bf16.gmra.mxu2 %v284_v14  ;;  %189 = vmatmul.bf16.gmra.mxu3 %v286_v15 }
  0x9e   :  { %v155_v17 = vpop.f32.mrf.mxu0  ;;  %v165_v18 = vpop.f32.mrf.mxu1 }
  0x9f   :  { %v156_v19 = vadd.f32 %v319_v16, %v155_v17  ;;  %v166_v20 = vadd.f32 %v319_v16, %v165_v18 }
  0xa1   :  { %195 = vst [vmem:[%s442_s3] sm:$0xff] %v156_v19 }
  0xa2   :  { %199 = vst [vmem:[%s442_s3 + $0x20] sm:$0xff] %v166_v20 }
  0xa5   :  { %v175_v21 = vpop.f32.mrf.mxu2  ;;  %v185_v22 = vpop.f32.mrf.mxu3 }
  0xa6   :  { %v176_v23 = vadd.f32 %v319_v16, %v175_v21  ;;  %v186_v24 = vadd.f32 %v319_v16, %v185_v22  ;;  %v157_v25 = vpop.f32.mrf.mxu0  ;;  %v167_v26 = vpop.f32.mrf.mxu1 }
  0xa7   :  { %v158_v27 = vadd.f32 %v319_v16, %v157_v25  ;;  %v168_v28 = vadd.f32 %v319_v16, %v167_v26 }
  0xa8   :  { %203 = vst [vmem:[%s442_s3 + $0x40] sm:$0xff] %v176_v23 }
  0xa9   :  { %207 = vst [vmem:[%s442_s3 + $0x60] sm:$0xff] %v186_v24 }
  0xaa   :  { %196 = vst [vmem:[%s442_s3 + $0x8] sm:$0xff] %v158_v27 }
  0xab   :  { %200 = vst [vmem:[%s442_s3 + $0x28] sm:$0xff] %v168_v28 }
  0xad   :  { %v177_v29 = vpop.f32.mrf.mxu2  ;;  %v187_v30 = vpop.f32.mrf.mxu3 }
  0xae   :  { %v178_v31 = vadd.f32 %v319_v16, %v177_v29  ;;  %v188_v32 = vadd.f32 %v319_v16, %v187_v30  ;;  %v160_v33 = vpop.f32.mrf.mxu0  ;;  %v170_v34 = vpop.f32.mrf.mxu1 }
  0xaf   :  { %v161_v35 = vadd.f32 %v319_v16, %v160_v33  ;;  %v171_v36 = vadd.f32 %v319_v16, %v170_v34 }
  0xb0   :  { %204 = vst [vmem:[%s442_s3 + $0x48] sm:$0xff] %v178_v31 }
  0xb1   :  { %208 = vst [vmem:[%s442_s3 + $0x68] sm:$0xff] %v188_v32 }
  0xb2   :  { %197 = vst [vmem:[%s442_s3 + $0x10] sm:$0xff] %v161_v35 }
  0xb3   :  { %201 = vst [vmem:[%s442_s3 + $0x30] sm:$0xff] %v171_v36 }
  0xb5   :  { %v180_v37 = vpop.f32.mrf.mxu2  ;;  %v190_v38 = vpop.f32.mrf.mxu3 }
  0xb6   :  { %v181_v39 = vadd.f32 %v319_v16, %v180_v37  ;;  %v191_v40 = vadd.f32 %v319_v16, %v190_v38  ;;  %v162_v41 = vpop.f32.mrf.mxu0  ;;  %v172_v42 = vpop.f32.mrf.mxu1 }
  0xb7   :  { %v163_v43 = vadd.f32 %v319_v16, %v162_v41  ;;  %v173_v44 = vadd.f32 %v319_v16, %v172_v42 }
  0xb8   :  { %205 = vst [vmem:[%s442_s3 + $0x50] sm:$0xff] %v181_v39 }
  0xb9   :  { %209 = vst [vmem:[%s442_s3 + $0x70] sm:$0xff] %v191_v40 }
  0xba   :  { %198 = vst [vmem:[%s442_s3 + $0x18] sm:$0xff] %v163_v43 }
  0xbb   :  { %202 = vst [vmem:[%s442_s3 + $0x38] sm:$0xff] %v173_v44 }
  0xbd   :  { %v182_v45 = vpop.f32.mrf.mxu2  ;;  %v192_v46 = vpop.f32.mrf.mxu3 }
  0xbe   :  { %v183_v47 = vadd.f32 %v319_v16, %v182_v45  ;;  %v193_v48 = vadd.f32 %v319_v16, %v192_v46 }
  0xc0   :  { %206 = vst [vmem:[%s442_s3 + $0x58] sm:$0xff] %v183_v47 }
  0xc1   :  { %210 = vst [vmem:[%s442_s3 + $0x78] sm:$0xff] %v193_v48 }

// kernel: teecnet_forward_pallas.13
= control target key start
LH: loop header
LB: loop body
LE: loop exit
PB: predicated region body
PF: predicated region fallthrough
CT: control target
= control target key end

     0   :  { %s719_s1 = inlined_call_operand.vmem [shape: bf16[128,256], index: 1, kind: input, shape index: {}]   ;;  %s720_s0 = inlined_call_operand.vmem [shape: f32[128,128], index: 0, kind: input, shape index: {}]   ;;  %s721_s2 = inlined_call_operand.vmem [shape: f32[1,256], index: 2, kind: input, shape index: {}]   ;;  %s722_s4 = inlined_call_operand.vmem [shape: f32[128,128], index: 4, kind: output, shape index: {1}]   ;;  %s723_s3 = inlined_call_operand.vmem [shape: bf16[128,128], index: 3, kind: output, shape index: {0}]  }
   0x1   :  { %v354_v0 = vld [vmem:[%s719_s1 + $0x70] sm:$0xf]  ;;  %v375_v1 = vld [vmem:[%s719_s1 + $0x74] sm:$0xf0]  ;;  %v374_v2 = vld [vmem:[%s719_s1 + $0x74] sm:$0xf] }
   0x2   :  { %v355_v3 = vor.u32 %v375_v1, %v354_v0  ;;  %v356_v4 = vld [vmem:[%s719_s1 + $0x78] sm:$0xf0]  ;;  %v346_v5 = vld [vmem:[%s719_s1 + $0x60] sm:$0xf]  ;;  %v373_v6 = vld [vmem:[%s719_s1 + $0x64] sm:$0xf0] }
   0x3   :  { %v359_v7 = vor.u32 %v374_v2, %v356_v4  ;;  %v372_v8 = vld [vmem:[%s719_s1 + $0x64] sm:$0xf]  ;;  %v348_v9 = vld [vmem:[%s719_s1 + $0x68] sm:$0xf0]  ;;  %v347_v10 = vor.u32 %v373_v6, %v346_v5  ;;  %v338_v12 = vld [vmem:[%s719_s1 + $0x50] sm:$0xf] }
   0x4   :  { %142 = vmatpush.bf16.msra.mxu0 %v355_v3  ;;  %423 = vmatpush.bf16.msra.mxu2 %v355_v3  ;;  %v351_v11 = vor.u32 %v372_v8, %v348_v9  ;;  %v371_v13 = vld [vmem:[%s719_s1 + $0x54] sm:$0xf0]  ;;  %v370_v14 = vld [vmem:[%s719_s1 + $0x54] sm:$0xf]  ;;  %v340_v15 = vld [vmem:[%s719_s1 + $0x58] sm:$0xf0] }
   0x5   :  { %191 = vmatpush.bf16.msra.mxu1 %v359_v7  ;;  %431 = vmatpush.bf16.msra.mxu3 %v359_v7  ;;  %v339_v16 = vor.u32 %v371_v13, %v338_v12  ;;  %v343_v17 = vor.u32 %v370_v14, %v340_v15  ;;  %v330_v18 = vld [vmem:[%s719_s1 + $0x40] sm:$0xf]  ;;  %v369_v19 = vld [vmem:[%s719_s1 + $0x44] sm:$0xf0]  ;;  %v368_v20 = vld [vmem:[%s719_s1 + $0x44] sm:$0xf] }
   0x6   :  { %v332_v21 = vld [vmem:[%s719_s1 + $0x48] sm:$0xf0]  ;;  %v331_v22 = vor.u32 %v369_v19, %v330_v18  ;;  %v322_v24 = vld [vmem:[%s719_s1 + $0x30] sm:$0xf]  ;;  %v367_v25 = vld [vmem:[%s719_s1 + $0x34] sm:$0xf0] }
   0x7   :  { %v335_v23 = vor.u32 %v368_v20, %v332_v21  ;;  %v366_v26 = vld [vmem:[%s719_s1 + $0x34] sm:$0xf]  ;;  %v324_v27 = vld [vmem:[%s719_s1 + $0x38] sm:$0xf0]  ;;  %v323_v28 = vor.u32 %v367_v25, %v322_v24  ;;  %v314_v30 = vld [vmem:[%s719_s1 + $0x20] sm:$0xf] }
   0x8   :  { %143 = vmatpush.bf16.msra.mxu0 %v347_v10  ;;  %424 = vmatpush.bf16.msra.mxu2 %v347_v10  ;;  %v327_v29 = vor.u32 %v366_v26, %v324_v27  ;;  %v365_v31 = vld [vmem:[%s719_s1 + $0x24] sm:$0xf0]  ;;  %v364_v32 = vld [vmem:[%s719_s1 + $0x24] sm:$0xf]  ;;  %v316_v33 = vld [vmem:[%s719_s1 + $0x28] sm:$0xf0] }
   0x9   :  { %192 = vmatpush.bf16.msra.mxu1 %v351_v11  ;;  %432 = vmatpush.bf16.msra.mxu3 %v351_v11  ;;  %v315_v34 = vor.u32 %v365_v31, %v314_v30  ;;  %v319_v35 = vor.u32 %v364_v32, %v316_v33  ;;  %v306_v36 = vld [vmem:[%s719_s1 + $0x10] sm:$0xf]  ;;  %v363_v37 = vld [vmem:[%s719_s1 + $0x14] sm:$0xf0]  ;;  %v362_v38 = vld [vmem:[%s719_s1 + $0x14] sm:$0xf] }
   0xa   :  { %v308_v39 = vld [vmem:[%s719_s1 + $0x18] sm:$0xf0]  ;;  %v307_v40 = vor.u32 %v363_v37, %v306_v36  ;;  %v298_v42 = vld [vmem:[%s719_s1] sm:$0xf]  ;;  %v361_v43 = vld [vmem:[%s719_s1 + $0x4] sm:$0xf0] }
   0xb   :  { %v311_v41 = vor.u32 %v362_v38, %v308_v39  ;;  %v360_v44 = vld [vmem:[%s719_s1 + $0x4] sm:$0xf]  ;;  %v300_v45 = vld [vmem:[%s719_s1 + $0x8] sm:$0xf0]  ;;  %v299_v47 = vor.u32 %v361_v43, %v298_v42  ;;  %v18_v54 = vld [vmem:[%s720_s0 + $0x10] sm:$0xff] }
   0xc   :  { %144 = vmatpush.bf16.msra.mxu0 %v339_v16  ;;  %425 = vmatpush.bf16.msra.mxu2 %v339_v16  ;;  %v16_v46 = vld [vmem:[%s720_s0] sm:$0xff]  ;;  %v17_v48 = vld [vmem:[%s720_s0 + $0x8] sm:$0xff]  ;;  %v303_v51 = vor.u32 %v360_v44, %v300_v45  ;;  %v19_v55 = vld [vmem:[%s720_s0 + $0x18] sm:$0xff] }
   0xd   :  { %193 = vmatpush.bf16.msra.mxu1 %v343_v17  ;;  %433 = vmatpush.bf16.msra.mxu3 %v343_v17  ;;  %v24_v49 = vld [vmem:[%s720_s0 + $0x40] sm:$0xff]  ;;  %v25_v50 = vld [vmem:[%s720_s0 + $0x48] sm:$0xff]  ;;  %v32_v52 = vpack.c.bf16 %v17_v48, %v16_v46  ;;  %v26_v56 = vld [vmem:[%s720_s0 + $0x50] sm:$0xff]  ;;  %v33_v58 = vpack.c.bf16 %v19_v55, %v18_v54 }
   0xe   :  { %v36_v53 = vpack.c.bf16 %v25_v50, %v24_v49  ;;  %v27_v57 = vld [vmem:[%s720_s0 + $0x58] sm:$0xff]  ;;  %v20_v60 = vld [vmem:[%s720_s0 + $0x20] sm:$0xff]  ;;  %v21_v61 = vld [vmem:[%s720_s0 + $0x28] sm:$0xff] }
   0xf   :  { %v37_v59 = vpack.c.bf16 %v27_v57, %v26_v56  ;;  %v28_v62 = vld [vmem:[%s720_s0 + $0x60] sm:$0xff]  ;;  %v29_v63 = vld [vmem:[%s720_s0 + $0x68] sm:$0xff]  ;;  %v34_v0 = vpack.c.bf16 %v21_v61, %v20_v60  ;;  %v22_v2 = vld [vmem:[%s720_s0 + $0x30] sm:$0xff] }
  0x10   :  { %145 = vmatpush.bf16.msra.mxu0 %v331_v22  ;;  %426 = vmatpush.bf16.msra.mxu2 %v331_v22  ;;  %v38_v1 = vpack.c.bf16 %v29_v63, %v28_v62  ;;  %v23_v3 = vld [vmem:[%s720_s0 + $0x38] sm:$0xff]  ;;  %v30_v4 = vld [vmem:[%s720_s0 + $0x70] sm:$0xff]  ;;  %v56_v8 = vld [vmem:[%s721_s2] sm:$0x3] }
  0x11   :  { %194 = vmatpush.bf16.msra.mxu1 %v335_v23  ;;  %434 = vmatpush.bf16.msra.mxu3 %v335_v23  ;;  %v31_v5 = vld [vmem:[%s720_s0 + $0x78] sm:$0xff]  ;;  %v35_v6 = vpack.c.bf16 %v23_v3, %v22_v2  ;;  %v611_v9 = vperm.slane %v56_v8, 1  ;;  %v617_v13 = vperm.slane %v56_v8, 0 }
  0x12   :  { %v39_v7 = vpack.c.bf16 %v31_v5, %v30_v4 }
  0x14   :  { %146 = vmatpush.bf16.msra.mxu0 %v323_v28  ;;  %427 = vmatpush.bf16.msra.mxu2 %v323_v28 }
  0x15   :  { %195 = vmatpush.bf16.msra.mxu1 %v327_v29  ;;  %435 = vmatpush.bf16.msra.mxu3 %v327_v29 }
  0x18   :  { %147 = vmatpush.bf16.msra.mxu0 %v315_v34  ;;  %428 = vmatpush.bf16.msra.mxu2 %v315_v34 }
  0x19   :  { %196 = vmatpush.bf16.msra.mxu1 %v319_v35  ;;  %436 = vmatpush.bf16.msra.mxu3 %v319_v35 }
  0x1c   :  { %148 = vmatpush.bf16.msra.mxu0 %v307_v40  ;;  %429 = vmatpush.bf16.msra.mxu2 %v307_v40 }
  0x1d   :  { %197 = vmatpush.bf16.msra.mxu1 %v311_v41  ;;  %437 = vmatpush.bf16.msra.mxu3 %v311_v41 }
  0x20   :  { %149 = vmatpush.bf16.msra.mxu0 %v299_v47  ;;  %430 = vmatpush.bf16.msra.mxu2 %v299_v47 }
  0x21   :  { %198 = vmatpush.bf16.msra.mxu1 %v303_v51  ;;  %438 = vmatpush.bf16.msra.mxu3 %v303_v51 }
  0x23   :  { %150 = vmatmul.bf16.vlgmr.msra.gmra.mxu0 %v32_v52  ;;  %170 = vmatmul.bf16.vlgmr.msra.gmra.mxu2 %v36_v53 }
  0x24   :  { %199 = vmatmul.bf16.vlgmr.msra.gmra.mxu1 %v32_v52  ;;  %219 = vmatmul.bf16.vlgmr.msra.gmra.mxu3 %v36_v53 }
  0x33   :  { %155 = vmatmul.bf16.gmra.mxu0 %v33_v58  ;;  %175 = vmatmul.bf16.gmra.mxu2 %v37_v59 }
  0x34   :  { %204 = vmatmul.bf16.gmra.mxu1 %v33_v58  ;;  %224 = vmatmul.bf16.gmra.mxu3 %v37_v59 }
  0x43   :  { %160 = vmatmul.bf16.gmra.mxu0 %v34_v0  ;;  %180 = vmatmul.bf16.gmra.mxu2 %v38_v1 }
  0x44   :  { %209 = vmatmul.bf16.gmra.mxu1 %v34_v0  ;;  %229 = vmatmul.bf16.gmra.mxu3 %v38_v1 }
  0x53   :  { %165 = vmatmul.bf16.gmra.mxu0 %v35_v6  ;;  %185 = vmatmul.bf16.gmra.mxu2 %v39_v7 }
  0x54   :  { %214 = vmatmul.bf16.gmra.mxu1 %v35_v6  ;;  %234 = vmatmul.bf16.gmra.mxu3 %v39_v7 }
  0xa0   :  { %v151_v10 = vpop.f32.mrf.mxu0 }
  0xa1   :  { %v200_v11 = vpop.f32.mrf.mxu1  ;;  %v152_v18 = vadd.f32 %v151_v10, %v617_v13 }
  0xa2   :  { %v201_v12 = vadd.f32 %v200_v11, %v611_v9 }
  0xa4   :  { %272 = vst [vmem:[%s722_s4] sm:$0xff] %v201_v12 }
  0xa6   :  { %v171_v14 = vpop.f32.mrf.mxu2 }
  0xa7   :  { %v220_v15 = vpop.f32.mrf.mxu3  ;;  %v172_v24 = vadd.f32 %v171_v14, %v617_v13 }
  0xa8   :  { %v221_v16 = vadd.f32 %v220_v15, %v611_v9  ;;  %v153_v17 = vpop.f32.mrf.mxu0 }
  0xa9   :  { %v154_v19 = vadd.f32 %v153_v17, %v617_v13  ;;  %v202_v20 = vpop.f32.mrf.mxu1 }
  0xaa   :  { %280 = vst [vmem:[%s722_s4 + $0x40] sm:$0xff] %v221_v16  ;;  %v203_v21 = vadd.f32 %v202_v20, %v611_v9 }
  0xab   :  { %v379_v22 = vpack.c.bf16 %v154_v19, %v152_v18 }
  0xac   :  { %273 = vst [vmem:[%s722_s4 + $0x8] sm:$0xff] %v203_v21 }
  0xad   :  { %380 = vst [vmem:[%s723_s3] sm:$0xff] %v379_v22  }
  0xae   :  { %v173_v23 = vpop.f32.mrf.mxu2 }
  0xaf   :  { %v174_v25 = vadd.f32 %v173_v23, %v617_v13  ;;  %v222_v26 = vpop.f32.mrf.mxu3 }
  0xb0   :  { %v223_v27 = vadd.f32 %v222_v26, %v611_v9  ;;  %v156_v28 = vpop.f32.mrf.mxu0 }
  0xb1   :  { %v399_v29 = vpack.c.bf16 %v174_v25, %v172_v24  ;;  %v205_v30 = vpop.f32.mrf.mxu1  ;;  %v157_v36 = vadd.f32 %v156_v28, %v617_v13 }
  0xb2   :  { %281 = vst [vmem:[%s722_s4 + $0x48] sm:$0xff] %v223_v27  ;;  %v206_v31 = vadd.f32 %v205_v30, %v611_v9 }
  0xb3   :  { %419 = vst [vmem:[%s723_s3 + $0x20] sm:$0xff] %v399_v29  }
  0xb4   :  { %274 = vst [vmem:[%s722_s4 + $0x10] sm:$0xff] %v206_v31 }
  0xb6   :  { %v176_v32 = vpop.f32.mrf.mxu2 }
  0xb7   :  { %v225_v33 = vpop.f32.mrf.mxu3  ;;  %v177_v42 = vadd.f32 %v176_v32, %v617_v13 }
  0xb8   :  { %v226_v34 = vadd.f32 %v225_v33, %v611_v9  ;;  %v158_v35 = vpop.f32.mrf.mxu0 }
  0xb9   :  { %v159_v37 = vadd.f32 %v158_v35, %v617_v13  ;;  %v207_v38 = vpop.f32.mrf.mxu1 }
  0xba   :  { %282 = vst [vmem:[%s722_s4 + $0x50] sm:$0xff] %v226_v34  ;;  %v208_v39 = vadd.f32 %v207_v38, %v611_v9 }
  0xbb   :  { %v384_v40 = vpack.c.bf16 %v159_v37, %v157_v36 }
  0xbc   :  { %275 = vst [vmem:[%s722_s4 + $0x18] sm:$0xff] %v208_v39 }
  0xbd   :  { %416 = vst [vmem:[%s723_s3 + $0x8] sm:$0xff] %v384_v40  }
  0xbe   :  { %v178_v41 = vpop.f32.mrf.mxu2 }
  0xbf   :  { %v179_v43 = vadd.f32 %v178_v41, %v617_v13  ;;  %v227_v44 = vpop.f32.mrf.mxu3 }
  0xc0   :  { %v228_v45 = vadd.f32 %v227_v44, %v611_v9  ;;  %v161_v46 = vpop.f32.mrf.mxu0 }
  0xc1   :  { %v404_v47 = vpack.c.bf16 %v179_v43, %v177_v42  ;;  %v210_v48 = vpop.f32.mrf.mxu1  ;;  %v162_v54 = vadd.f32 %v161_v46, %v617_v13 }
  0xc2   :  { %283 = vst [vmem:[%s722_s4 + $0x58] sm:$0xff] %v228_v45  ;;  %v211_v49 = vadd.f32 %v210_v48, %v611_v9 }
  0xc3   :  { %420 = vst [vmem:[%s723_s3 + $0x28] sm:$0xff] %v404_v47  }
  0xc4   :  { %276 = vst [vmem:[%s722_s4 + $0x20] sm:$0xff] %v211_v49 }
  0xc6   :  { %v181_v50 = vpop.f32.mrf.mxu2 }
  0xc7   :  { %v230_v51 = vpop.f32.mrf.mxu3  ;;  %v182_v60 = vadd.f32 %v181_v50, %v617_v13 }
  0xc8   :  { %v231_v52 = vadd.f32 %v230_v51, %v611_v9  ;;  %v163_v53 = vpop.f32.mrf.mxu0 }
  0xc9   :  { %v164_v55 = vadd.f32 %v163_v53, %v617_v13  ;;  %v212_v56 = vpop.f32.mrf.mxu1 }
  0xca   :  { %284 = vst [vmem:[%s722_s4 + $0x60] sm:$0xff] %v231_v52  ;;  %v213_v57 = vadd.f32 %v212_v56, %v611_v9 }
  0xcb   :  { %v389_v58 = vpack.c.bf16 %v164_v55, %v162_v54 }
  0xcc   :  { %277 = vst [vmem:[%s722_s4 + $0x28] sm:$0xff] %v213_v57 }
  0xcd   :  { %417 = vst [vmem:[%s723_s3 + $0x10] sm:$0xff] %v389_v58  }
  0xce   :  { %v183_v59 = vpop.f32.mrf.mxu2 }
  0xcf   :  { %v184_v61 = vadd.f32 %v183_v59, %v617_v13  ;;  %v232_v62 = vpop.f32.mrf.mxu3 }
  0xd0   :  { %v233_v63 = vadd.f32 %v232_v62, %v611_v9  ;;  %v166_v0 = vpop.f32.mrf.mxu0 }
  0xd1   :  { %v409_v1 = vpack.c.bf16 %v184_v61, %v182_v60  ;;  %v215_v2 = vpop.f32.mrf.mxu1  ;;  %v167_v8 = vadd.f32 %v166_v0, %v617_v13 }
  0xd2   :  { %285 = vst [vmem:[%s722_s4 + $0x68] sm:$0xff] %v233_v63  ;;  %v216_v3 = vadd.f32 %v215_v2, %v611_v9 }
  0xd3   :  { %421 = vst [vmem:[%s723_s3 + $0x30] sm:$0xff] %v409_v1  }
  0xd4   :  { %278 = vst [vmem:[%s722_s4 + $0x30] sm:$0xff] %v216_v3 }
  0xd6   :  { %v186_v4 = vpop.f32.mrf.mxu2 }
  0xd7   :  { %v235_v5 = vpop.f32.mrf.mxu3  ;;  %v187_v16 = vadd.f32 %v186_v4, %v617_v13 }
  0xd8   :  { %v236_v6 = vadd.f32 %v235_v5, %v611_v9  ;;  %v168_v7 = vpop.f32.mrf.mxu0 }
  0xd9   :  { %v169_v10 = vadd.f32 %v168_v7, %v617_v13  ;;  %v217_v11 = vpop.f32.mrf.mxu1 }
  0xda   :  { %286 = vst [vmem:[%s722_s4 + $0x70] sm:$0xff] %v236_v6  ;;  %v218_v12 = vadd.f32 %v217_v11, %v611_v9 }
  0xdb   :  { %v394_v14 = vpack.c.bf16 %v169_v10, %v167_v8 }
  0xdc   :  { %279 = vst [vmem:[%s722_s4 + $0x38] sm:$0xff] %v218_v12 }
  0xdd   :  { %418 = vst [vmem:[%s723_s3 + $0x18] sm:$0xff] %v394_v14  }
  0xde   :  { %v188_v15 = vpop.f32.mrf.mxu2 }
  0xdf   :  { %v189_v17 = vadd.f32 %v188_v15, %v617_v13  ;;  %v237_v18 = vpop.f32.mrf.mxu3 }
  0xe0   :  { %v238_v19 = vadd.f32 %v237_v18, %v611_v9 }
  0xe1   :  { %v414_v20 = vpack.c.bf16 %v189_v17, %v187_v16 }
  0xe2   :  { %287 = vst [vmem:[%s722_s4 + $0x78] sm:$0xff] %v238_v19 }
  0xe3   :  { %422 = vst [vmem:[%s723_s3 + $0x38] sm:$0xff] %v414_v20  }

// kernel: teecnet_forward_pallas.11
= control target key start
LH: loop header
LB: loop body
LE: loop exit
PB: predicated region body
PF: predicated region fallthrough
CT: control target
= control target key end

     0   :  { %s1557_s30 = smov 0   ;;  %s1866_s0 = inlined_call_operand.vmem [shape: bf16[256,128], index: 0, kind: input, shape index: {}]   ;;  %s1867_s1 = inlined_call_operand.vmem [shape: bf16[128,128], index: 1, kind: input, shape index: {}]   ;;  %s1868_s2 = inlined_call_operand.vmem [shape: f32[1,128], index: 2, kind: input, shape index: {}]   ;;  %s1869_s3 = inlined_call_operand.vmem [shape: bf16[128,128], index: 3, kind: input, shape index: {}]   ;;  %s1870_s4 = inlined_call_operand.vmem [shape: f32[1,128], index: 4, kind: input, shape index: {}]   ;;  %s1871_s5 = inlined_call_operand.vmem [shape: bf16[128,128], index: 5, kind: input, shape index: {}]   ;;  %s1872_s6 = inlined_call_operand.vmem [shape: f32[1,128], index: 6, kind: input, shape index: {}]   ;;  %s1873_s7 = inlined_call_operand.vmem [shape: bf16[128,256], index: 7, kind: input, shape index: {}]   ;;  %s1874_s8 = inlined_call_operand.vmem [shape: f32[1,256], index: 8, kind: input, shape index: {}]   ;;  %s1875_s9 = inlined_call_operand.vmem [shape: bf16[256,256], index: 9, kind: output, shape index: {}]  }
   0x1 LB: > { %s1211_s10 = sadd.s32 4294967295, %s1505_s30   ;;  %p1215_p0 = scmp.ge.s32.totalorder %s1505_s30, 1  ;;  %s1505_s30 = sphi %s1557_s30, %s19_s30  }
   0x2   : > { %p288_p1 = scmp.lt.s32.totalorder %s1505_s30, 3 }
   0x4   : > { %p289_p2 = pnand %p1215_p0, %p288_p1 }
   0x5   : > { %s1216_s19 = sshll.u32 (!%p289_p2), %s1211_s10, 4 }
   0x6   : > { %292 = sbr.rel (%p289_p2) target bundleno = 729 (0x2d9), region = 56  ;;  %p326_p3 = scmp.lt.s32.totalorder (!%p289_p2), %s1216_s19, 31 }
   0xb   : > { %v1431_v0 = vld [vmem:[%s1867_s1 + $0x38] sm:$0xff]  ;;  %v1430_v1 = vld [vmem:[%s1867_s1 + $0x30] sm:$0xff]  ;;  %v1429_v2 = vld [vmem:[%s1867_s1 + $0x28] sm:$0xff]  ;;  %s1877_s19 = smov (!%p326_p3, %s1216_s19), 31 }
   0xc   : > { %470 = vmatpush.bf16.msra.mxu0 %v1431_v0  ;;  %1464 = vmatpush.bf16.msra.mxu1 %v1431_v0  ;;  %v1428_v3 = vld [vmem:[%s1867_s1 + $0x20] sm:$0xff]  ;;  %v1427_v4 = vld [vmem:[%s1867_s1 + $0x18] sm:$0xff]  ;;  %v1426_v5 = vld [vmem:[%s1867_s1 + $0x10] sm:$0xff]  ;;  %s1217_s26 = sshll.u32 %s1877_s19, 2  ;;  %s1415_s22 = sshll.u32 %s1877_s19, 3 }
   0xd   : > { %1465 = vmatpush.bf16.msra.mxu2 %v1431_v0  ;;  %1466 = vmatpush.bf16.msra.mxu3 %v1431_v0  ;;  %v1425_v6 = vld [vmem:[%s1867_s1 + $0x8] sm:$0xff]  ;;  %v1424_v7 = vld [vmem:[%s1867_s1] sm:$0xff]  ;;  %s329_s11 = scalar_lea.vmem %s1866_s0, %s1217_s26  ;;  %v1439_v8 = vld [vmem:[%s1869_s3 + $0x38] sm:$0xff]  ;;  %s1815_s25 = scalar_lea.vmem %s1875_s9, %s1415_s22 }
   0xe   : > { %v1416_v9 = vld [vmem:[%s329_s11] sm:$0xff]  ;;  %v1418_v10 = vld [vmem:[%s329_s11 + $0x10] sm:$0xff]  ;;  %v1437_v14 = vld [vmem:[%s1869_s3 + $0x28] sm:$0xff] }
   0xf   : > { %v1420_v11 = vld [vmem:[%s329_s11 + $0x20] sm:$0xff]  ;;  %v1422_v12 = vld [vmem:[%s329_s11 + $0x30] sm:$0xff]  ;;  %v1417_v16 = vld [vmem:[%s329_s11 + $0x8] sm:$0xff] }
  0x10   : > { %471 = vmatpush.bf16.msra.mxu0 %v1430_v1  ;;  %1467 = vmatpush.bf16.msra.mxu1 %v1430_v1  ;;  %v1438_v13 = vld [vmem:[%s1869_s3 + $0x30] sm:$0xff]  ;;  %v1436_v15 = vld [vmem:[%s1869_s3 + $0x20] sm:$0xff]  ;;  %v1419_v17 = vld [vmem:[%s329_s11 + $0x18] sm:$0xff] }
  0x11   : > { %1468 = vmatpush.bf16.msra.mxu2 %v1430_v1  ;;  %1469 = vmatpush.bf16.msra.mxu3 %v1430_v1  ;;  %v1421_v18 = vld [vmem:[%s329_s11 + $0x28] sm:$0xff]  ;;  %v1423_v19 = vld [vmem:[%s329_s11 + $0x38] sm:$0xff]  ;;  %v1434_v21 = vld [vmem:[%s1869_s3 + $0x10] sm:$0xff] }
  0x12   : > { %v1435_v20 = vld [vmem:[%s1869_s3 + $0x18] sm:$0xff]  ;;  %v1433_v22 = vld [vmem:[%s1869_s3 + $0x8] sm:$0xff]  ;;  %v1432_v23 = vld [vmem:[%s1869_s3] sm:$0xff] }
  0x13   : > { %v1622_v25 = vld [vmem:[%s1868_s2] ss:$0 sm:$0xff] }
  0x14   : > { %472 = vmatpush.bf16.msra.mxu0 %v1429_v2  ;;  %1470 = vmatpush.bf16.msra.mxu1 %v1429_v2 }
  0x15   : > { %1471 = vmatpush.bf16.msra.mxu2 %v1429_v2  ;;  %1472 = vmatpush.bf16.msra.mxu3 %v1429_v2 }
  0x18   : > { %473 = vmatpush.bf16.msra.mxu0 %v1428_v3  ;;  %1473 = vmatpush.bf16.msra.mxu1 %v1428_v3 }
  0x19   : > { %1474 = vmatpush.bf16.msra.mxu2 %v1428_v3  ;;  %1475 = vmatpush.bf16.msra.mxu3 %v1428_v3 }
  0x1c   : > { %474 = vmatpush.bf16.msra.mxu0 %v1427_v4  ;;  %1476 = vmatpush.bf16.msra.mxu1 %v1427_v4 }
  0x1d   : > { %1477 = vmatpush.bf16.msra.mxu2 %v1427_v4  ;;  %1478 = vmatpush.bf16.msra.mxu3 %v1427_v4 }
  0x20   : > { %475 = vmatpush.bf16.msra.mxu0 %v1426_v5  ;;  %1479 = vmatpush.bf16.msra.mxu1 %v1426_v5 }
  0x21   : > { %1480 = vmatpush.bf16.msra.mxu2 %v1426_v5  ;;  %1481 = vmatpush.bf16.msra.mxu3 %v1426_v5 }
  0x24   : > { %476 = vmatpush.bf16.msra.mxu0 %v1425_v6  ;;  %1482 = vmatpush.bf16.msra.mxu1 %v1425_v6 }
  0x25   : > { %1483 = vmatpush.bf16.msra.mxu2 %v1425_v6  ;;  %1484 = vmatpush.bf16.msra.mxu3 %v1425_v6 }
  0x28   : > { %477 = vmatpush.bf16.msra.mxu0 %v1424_v7  ;;  %1485 = vmatpush.bf16.msra.mxu1 %v1424_v7 }
  0x29   : > { %1486 = vmatpush.bf16.msra.mxu2 %v1424_v7  ;;  %1487 = vmatpush.bf16.msra.mxu3 %v1424_v7 }
  0x2b   : > { %478 = vmatmul.bf16.vlgmr.msra.gmra.mxu0 %v1416_v9  ;;  %488 = vmatmul.bf16.vlgmr.msra.gmra.mxu1 %v1418_v10 }
  0x2c   : > { %643 = vmatpush.bf16.msrb.mxu1 %v1439_v8  ;;  %498 = vmatmul.bf16.vlgmr.msra.gmra.mxu2 %v1420_v11  ;;  %v1447_v8 = vld [vmem:[%s1871_s5 + $0x38] sm:$0xff] }
  0x2d   : > { %508 = vmatmul.bf16.vlgmr.msra.gmra.mxu3 %v1422_v12  ;;  %816 = vmatpush.bf16.msrb.mxu2 %v1447_v8 }
  0x30   : > { %644 = vmatpush.bf16.msrb.mxu1 %v1438_v13 }
  0x34   : > { %645 = vmatpush.bf16.msrb.mxu1 %v1437_v14 }
  0x38   : > { %646 = vmatpush.bf16.msrb.mxu1 %v1436_v15 }
  0x3b   : > { %483 = vmatmul.bf16.gmra.mxu0 %v1417_v16  ;;  %493 = vmatmul.bf16.gmra.mxu1 %v1419_v17 }
  0x3c   : > { %503 = vmatmul.bf16.gmra.mxu2 %v1421_v18  ;;  %647 = vmatpush.bf16.msrb.mxu1 %v1435_v20  ;;  %v1446_v18 = vld [vmem:[%s1871_s5 + $0x30] sm:$0xff] }
  0x3d   : > { %513 = vmatmul.bf16.gmra.mxu3 %v1423_v19  ;;  %817 = vmatpush.bf16.msrb.mxu2 %v1446_v18  ;;  %v1445_v19 = vld [vmem:[%s1871_s5 + $0x28] sm:$0xff] }
  0x40   : > { %648 = vmatpush.bf16.msrb.mxu1 %v1434_v21 }
  0x41   : > { %818 = vmatpush.bf16.msrb.mxu2 %v1445_v19 }
  0x44   : > { %649 = vmatpush.bf16.msrb.mxu1 %v1433_v22 }
  0x48   : > { %650 = vmatpush.bf16.msrb.mxu1 %v1432_v23  ;;  %v1444_v23 = vld [vmem:[%s1871_s5 + $0x20] sm:$0xff] }
  0x49   : > { %819 = vmatpush.bf16.msrb.mxu2 %v1444_v23 }
  0xa8   : > { %v479_v24 = vpop.f32.mrf.mxu0  ;;  %v489_v35 = vpop.f32.mrf.mxu1 }
  0xa9   : > { %v480_v26 = vadd.f32 %v1622_v25, %v479_v24  ;;  %v490_v45 = vadd.f32 %v1622_v25, %v489_v35  ;;  %v1441_v35 = vld [vmem:[%s1871_s5 + $0x8] sm:$0xff] }
  0xab   : > { %v535_v28 = vmul.f32 0.01, %v480_v26  ;;  %vm519_vm0 = vcmp.ge.f32.partialorder %v480_v26, 0.0  ;;  %v539_v48 = vmul.f32 0.01, %v490_v45  ;;  %vm523_vm4 = vcmp.ge.f32.partialorder %v490_v45, 0.0 }
  0xad   : > { %v551_v31 = vsel %vm519_vm0, %v480_v26, %v535_v28  ;;  %v555_v50 = vsel %vm523_vm4, %v490_v45, %v539_v48 }
  0xaf   : > { %v499_v54 = vpop.f32.mrf.mxu2 }
  0xb0   : > { %v481_v27 = vpop.f32.mrf.mxu0  ;;  %v491_v41 = vpop.f32.mrf.mxu1  ;;  %v500_v63 = vadd.f32 %v1622_v25, %v499_v54 }
  0xb1   : > { %v482_v29 = vadd.f32 %v1622_v25, %v481_v27  ;;  %v492_v46 = vadd.f32 %v1622_v25, %v491_v41  ;;  %v509_v9 = vpop.f32.mrf.mxu3 }
  0xb2   : > { %v543_v2 = vmul.f32 0.01, %v500_v63  ;;  %vm527_vm8 = vcmp.ge.f32.partialorder %v500_v63, 0.0  ;;  %v510_v20 = vadd.f32 %v1622_v25, %v509_v9 }
  0xb3   : > { %vm520_vm1 = vcmp.ge.f32.partialorder %v482_v29, 0.0  ;;  %v536_v30 = vmul.f32 0.01, %v482_v29  ;;  %v540_v49 = vmul.f32 0.01, %v492_v46  ;;  %vm524_vm5 = vcmp.ge.f32.partialorder %v492_v46, 0.0 }
  0xb4   : > { %v559_v4 = vsel %vm527_vm8, %v500_v63, %v543_v2  ;;  %v547_v24 = vmul.f32 0.01, %v510_v20  ;;  %vm531_vm12 = vcmp.ge.f32.partialorder %v510_v20, 0.0 }
  0xb5   : > { %v552_v32 = vsel %vm520_vm1, %v482_v29, %v536_v30  ;;  %v556_v51 = vsel %vm524_vm5, %v492_v46, %v540_v49  ;;  %v1443_v29 = vld [vmem:[%s1871_s5 + $0x18] sm:$0xff] }
  0xb6   : > { %v567_v33 = vpack.c.bf16 %v552_v32, %v551_v31  ;;  %v569_v52 = vpack.c.bf16 %v556_v51, %v555_v50  ;;  %v563_v27 = vsel %vm531_vm12, %v510_v20, %v547_v24  ;;  %820 = vmatpush.bf16.msrb.mxu2 %v1443_v29  ;;  %v1442_v32 = vld [vmem:[%s1871_s5 + $0x10] sm:$0xff] }
  0xb7   : > { %v501_v61 = vpop.f32.mrf.mxu2 }
  0xb8   : > { %v484_v34 = vpop.f32.mrf.mxu0  ;;  %651 = vmatmul.bf16.vlgmr.msrb.gmra.mxu1 %v567_v33  ;;  %v494_v47 = vpop.f32.mrf.mxu1  ;;  %v502_v0 = vadd.f32 %v1622_v25, %v501_v61 }
  0xb9   : > { %v485_v36 = vadd.f32 %v1622_v25, %v484_v34  ;;  %v495_v55 = vadd.f32 %v1622_v25, %v494_v47  ;;  %v511_v16 = vpop.f32.mrf.mxu3 }
  0xba   : > { %v544_v3 = vmul.f32 0.01, %v502_v0  ;;  %vm528_vm9 = vcmp.ge.f32.partialorder %v502_v0, 0.0  ;;  %v512_v21 = vadd.f32 %v1622_v25, %v511_v16  ;;  %821 = vmatpush.bf16.msrb.mxu2 %v1442_v32 }
  0xbb   : > { %v537_v38 = vmul.f32 0.01, %v485_v36  ;;  %vm521_vm2 = vcmp.ge.f32.partialorder %v485_v36, 0.0  ;;  %v541_v57 = vmul.f32 0.01, %v495_v55  ;;  %vm525_vm6 = vcmp.ge.f32.partialorder %v495_v55, 0.0 }
  0xbc   : > { %v560_v5 = vsel %vm528_vm9, %v502_v0, %v544_v3  ;;  %v548_v26 = vmul.f32 0.01, %v512_v21  ;;  %vm532_vm13 = vcmp.ge.f32.partialorder %v512_v21, 0.0 }
  0xbd   : > { %v553_v42 = vsel %vm521_vm2, %v485_v36, %v537_v38  ;;  %v557_v59 = vsel %vm525_vm6, %v495_v55, %v541_v57  ;;  %v571_v6 = vpack.c.bf16 %v560_v5, %v559_v4  ;;  %v1440_v38 = vld [vmem:[%s1871_s5] sm:$0xff] }
  0xbe   : > { %v564_v28 = vsel %vm532_vm13, %v512_v21, %v548_v26  ;;  %822 = vmatpush.bf16.msrb.mxu2 %v1441_v35  ;;  %v1463_v35 = vld [vmem:[%s1873_s7 + $0x74] sm:$0xf0] }
  0xbf   : > { %v504_v1 = vpop.f32.mrf.mxu2  ;;  %v573_v30 = vpack.c.bf16 %v564_v28, %v563_v27 }
  0xc0   : > { %v486_v37 = vpop.f32.mrf.mxu0  ;;  %v496_v53 = vpop.f32.mrf.mxu1  ;;  %v505_v10 = vadd.f32 %v1622_v25, %v504_v1 }
  0xc1   : > { %v487_v39 = vadd.f32 %v1622_v25, %v486_v37  ;;  %v497_v56 = vadd.f32 %v1622_v25, %v496_v53  ;;  %v514_v22 = vpop.f32.mrf.mxu3 }
  0xc2   : > { %v545_v12 = vmul.f32 0.01, %v505_v10  ;;  %vm529_vm10 = vcmp.ge.f32.partialorder %v505_v10, 0.0  ;;  %v515_v33 = vadd.f32 %v1622_v25, %v514_v22  ;;  %823 = vmatpush.bf16.msrb.mxu2 %v1440_v38  ;;  %v1409_v38 = vld [vmem:[%s1873_s7 + $0x78] sm:$0xf0] }
  0xc3   : > { %v538_v40 = vmul.f32 0.01, %v487_v39  ;;  %vm522_vm3 = vcmp.ge.f32.partialorder %v487_v39, 0.0  ;;  %v542_v58 = vmul.f32 0.01, %v497_v56  ;;  %vm526_vm7 = vcmp.ge.f32.partialorder %v497_v56, 0.0 }
  0xc4   : > { %v561_v14 = vsel %vm529_vm10, %v505_v10, %v545_v12  ;;  %v549_v36 = vmul.f32 0.01, %v515_v33  ;;  %vm533_vm14 = vcmp.ge.f32.partialorder %v515_v33, 0.0 }
  0xc5   : > { %v554_v43 = vsel %vm522_vm3, %v487_v39, %v538_v40  ;;  %v558_v60 = vsel %vm526_vm7, %v497_v56, %v542_v58 }
  0xc6   : > { %v568_v44 = vpack.c.bf16 %v554_v43, %v553_v42  ;;  %v570_v62 = vpack.c.bf16 %v558_v60, %v557_v59  ;;  %v565_v39 = vsel %vm533_vm14, %v515_v33, %v549_v36  ;;  %v1462_v36 = vld [vmem:[%s1873_s7 + $0x74] sm:$0xf] }
  0xc7   : > { %v506_v7 = vpop.f32.mrf.mxu2 }
  0xc8   : > { %656 = vmatmul.bf16.gmra.mxu1 %v568_v44  ;;  %v507_v11 = vadd.f32 %v1622_v25, %v506_v7 }
  0xc9   : > { %v516_v31 = vpop.f32.mrf.mxu3 }
  0xca   : > { %v546_v13 = vmul.f32 0.01, %v507_v11  ;;  %vm530_vm11 = vcmp.ge.f32.partialorder %v507_v11, 0.0  ;;  %v517_v34 = vadd.f32 %v1622_v25, %v516_v31  ;;  %v1667_v25 = vld [vmem:[%s1870_s4] ss:$0 sm:$0xff] }
  0xcc   : > { %v562_v15 = vsel %vm530_vm11, %v507_v11, %v546_v13  ;;  %v550_v37 = vmul.f32 0.01, %v517_v34  ;;  %vm534_vm15 = vcmp.ge.f32.partialorder %v517_v34, 0.0 }
  0xcd   : > { %v572_v17 = vpack.c.bf16 %v562_v15, %v561_v14 }
  0xce   : > { %v566_v40 = vsel %vm534_vm15, %v517_v34, %v550_v37  ;;  %v1407_v34 = vld [vmem:[%s1873_s7 + $0x70] sm:$0xf] }
  0xcf   : > { %v574_v41 = vpack.c.bf16 %v566_v40, %v565_v39  ;;  %v1408_v37 = vor.u32 %v1463_v35, %v1407_v34  ;;  %v1399_v39 = vld [vmem:[%s1873_s7 + $0x60] sm:$0xf]  ;;  %v1461_v40 = vld [vmem:[%s1873_s7 + $0x64] sm:$0xf0] }
  0xd1   : > { %1023 = vmatpush.bf16.msrb.mxu3 %v1408_v37 }
  0xd8   : > { %661 = vmatmul.bf16.gmra.mxu1 %v569_v52 }
  0xe8   : > { %666 = vmatmul.bf16.gmra.mxu1 %v570_v62 }
  0xf8   : > { %671 = vmatmul.bf16.gmra.mxu1 %v571_v6 }
 0x108   : > { %676 = vmatmul.bf16.gmra.mxu1 %v572_v17 }
 0x118   : > { %681 = vmatmul.bf16.gmra.mxu1 %v573_v30 }
 0x128   : > { %686 = vmatmul.bf16.gmra.mxu1 %v574_v41  ;;  %v1412_v41 = vor.u32 %v1462_v36, %v1409_v38  ;;  %v1784_v36 = vld [vmem:[%s1872_s6] ss:$0 sm:$0xff] }
 0x12a   : > { %1072 = vmatpush.bf16.msrb.mxu0 %v1412_v41 }
 0x135   : > { %v652_v42 = vpop.f32.mrf.mxu1 }
 0x136   : > { %v653_v43 = vadd.f32 %v1667_v25, %v652_v42  ;;  %v1460_v42 = vld [vmem:[%s1873_s7 + $0x64] sm:$0xf] }
 0x138   : > { %v708_v45 = vmul.f32 0.01, %v653_v43  ;;  %vm692_vm0 = vcmp.ge.f32.partialorder %v653_v43, 0.0 }
 0x13a   : > { %v724_v48 = vsel %vm692_vm0, %v653_v43, %v708_v45  ;;  %v1401_v43 = vld [vmem:[%s1873_s7 + $0x68] sm:$0xf0] }
 0x13b   : > { %v1404_v45 = vor.u32 %v1460_v42, %v1401_v43 }
 0x13d   : > { %v654_v44 = vpop.f32.mrf.mxu1  ;;  %1073 = vmatpush.bf16.msrb.mxu0 %v1404_v45 }
 0x13e   : > { %v655_v46 = vadd.f32 %v1667_v25, %v654_v44  ;;  %v1400_v44 = vor.u32 %v1461_v40, %v1399_v39 }
 0x140   : > { %vm693_vm1 = vcmp.ge.f32.partialorder %v655_v46, 0.0  ;;  %v709_v47 = vmul.f32 0.01, %v655_v46  ;;  %1024 = vmatpush.bf16.msrb.mxu3 %v1400_v44 }
 0x142   : > { %v725_v49 = vsel %vm693_vm1, %v655_v46, %v709_v47  ;;  %v1391_v46 = vld [vmem:[%s1873_s7 + $0x50] sm:$0xf]  ;;  %v1459_v47 = vld [vmem:[%s1873_s7 + $0x54] sm:$0xf0] }
 0x143   : > { %v740_v50 = vpack.c.bf16 %v725_v49, %v724_v48  ;;  %v1458_v49 = vld [vmem:[%s1873_s7 + $0x54] sm:$0xf] }
 0x145   : > { %v657_v51 = vpop.f32.mrf.mxu1  ;;  %824 = vmatmul.bf16.vlgmr.msrb.gmra.mxu2 %v740_v50  ;;  %v1393_v50 = vld [vmem:[%s1873_s7 + $0x58] sm:$0xf0] }
 0x146   : > { %v658_v52 = vadd.f32 %v1667_v25, %v657_v51  ;;  %v1392_v51 = vor.u32 %v1459_v47, %v1391_v46 }
 0x148   : > { %v710_v54 = vmul.f32 0.01, %v658_v52  ;;  %vm694_vm2 = vcmp.ge.f32.partialorder %v658_v52, 0.0  ;;  %1025 = vmatpush.bf16.msrb.mxu3 %v1392_v51 }
 0x14a   : > { %v726_v57 = vsel %vm694_vm2, %v658_v52, %v710_v54  ;;  %v1383_v54 = vld [vmem:[%s1873_s7 + $0x40] sm:$0xf] }
 0x14d   : > { %v659_v53 = vpop.f32.mrf.mxu1 }
 0x14e   : > { %v660_v55 = vadd.f32 %v1667_v25, %v659_v53  ;;  %v1396_v53 = vor.u32 %v1458_v49, %v1393_v50 }
 0x150   : > { %v711_v56 = vmul.f32 0.01, %v660_v55  ;;  %vm695_vm3 = vcmp.ge.f32.partialorder %v660_v55, 0.0  ;;  %1074 = vmatpush.bf16.msrb.mxu0 %v1396_v53 }
 0x152   : > { %v727_v58 = vsel %vm695_vm3, %v660_v55, %v711_v56  ;;  %v1457_v55 = vld [vmem:[%s1873_s7 + $0x44] sm:$0xf0] }
 0x153   : > { %v741_v59 = vpack.c.bf16 %v727_v58, %v726_v57  ;;  %v1456_v58 = vld [vmem:[%s1873_s7 + $0x44] sm:$0xf] }
 0x155   : > { %v662_v60 = vpop.f32.mrf.mxu1  ;;  %829 = vmatmul.bf16.gmra.mxu2 %v741_v59  ;;  %v1385_v59 = vld [vmem:[%s1873_s7 + $0x48] sm:$0xf0] }
 0x156   : > { %v663_v61 = vadd.f32 %v1667_v25, %v662_v60 }
 0x158   : > { %v712_v63 = vmul.f32 0.01, %v663_v61  ;;  %vm696_vm4 = vcmp.ge.f32.partialorder %v663_v61, 0.0 }
 0x15a   : > { %v728_v2 = vsel %vm696_vm4, %v663_v61, %v712_v63  ;;  %v1384_v61 = vor.u32 %v1457_v55, %v1383_v54 }
 0x15c   : > { %1026 = vmatpush.bf16.msrb.mxu3 %v1384_v61 }
 0x15d   : > { %v664_v62 = vpop.f32.mrf.mxu1 }
 0x15e   : > { %v665_v0 = vadd.f32 %v1667_v25, %v664_v62  ;;  %v1388_v62 = vor.u32 %v1456_v58, %v1385_v59 }
 0x160   : > { %v713_v1 = vmul.f32 0.01, %v665_v0  ;;  %vm697_vm5 = vcmp.ge.f32.partialorder %v665_v0, 0.0  ;;  %1075 = vmatpush.bf16.msrb.mxu0 %v1388_v62 }
 0x162   : > { %v729_v3 = vsel %vm697_vm5, %v665_v0, %v713_v1 }
 0x163   : > { %v742_v4 = vpack.c.bf16 %v729_v3, %v728_v2  ;;  %v1375_v3 = vld [vmem:[%s1873_s7 + $0x30] sm:$0xf] }
 0x165   : > { %v667_v5 = vpop.f32.mrf.mxu1  ;;  %834 = vmatmul.bf16.gmra.mxu2 %v742_v4  ;;  %v1455_v4 = vld [vmem:[%s1873_s7 + $0x34] sm:$0xf0] }
 0x166   : > { %v668_v6 = vadd.f32 %v1667_v25, %v667_v5  ;;  %v1454_v5 = vld [vmem:[%s1873_s7 + $0x34] sm:$0xf] }
 0x168   : > { %v714_v8 = vmul.f32 0.01, %v668_v6  ;;  %vm698_vm6 = vcmp.ge.f32.partialorder %v668_v6, 0.0 }
 0x16a   : > { %v730_v11 = vsel %vm698_vm6, %v668_v6, %v714_v8  ;;  %v1376_v6 = vor.u32 %v1455_v4, %v1375_v3 }
 0x16c   : > { %1027 = vmatpush.bf16.msrb.mxu3 %v1376_v6 }
 0x16d   : > { %v669_v7 = vpop.f32.mrf.mxu1 }
 0x16e   : > { %v670_v9 = vadd.f32 %v1667_v25, %v669_v7  ;;  %v1377_v7 = vld [vmem:[%s1873_s7 + $0x38] sm:$0xf0] }
 0x16f   : > { %v1380_v8 = vor.u32 %v1454_v5, %v1377_v7 }
 0x170   : > { %v715_v10 = vmul.f32 0.01, %v670_v9  ;;  %vm699_vm7 = vcmp.ge.f32.partialorder %v670_v9, 0.0 }
 0x171   : > { %1076 = vmatpush.bf16.msrb.mxu0 %v1380_v8 }
 0x172   : > { %v731_v12 = vsel %vm699_vm7, %v670_v9, %v715_v10  ;;  %v1367_v10 = vld [vmem:[%s1873_s7 + $0x20] sm:$0xf] }
 0x173   : > { %v743_v13 = vpack.c.bf16 %v731_v12, %v730_v11  ;;  %v1453_v11 = vld [vmem:[%s1873_s7 + $0x24] sm:$0xf0]  ;;  %v1452_v12 = vld [vmem:[%s1873_s7 + $0x24] sm:$0xf] }
 0x175   : > { %v672_v14 = vpop.f32.mrf.mxu1  ;;  %839 = vmatmul.bf16.gmra.mxu2 %v743_v13  ;;  %v1368_v13 = vor.u32 %v1453_v11, %v1367_v10 }
 0x176   : > { %v673_v15 = vadd.f32 %v1667_v25, %v672_v14  ;;  %v1369_v14 = vld [vmem:[%s1873_s7 + $0x28] sm:$0xf0] }
 0x177   : > { %1028 = vmatpush.bf16.msrb.mxu3 %v1368_v13 }
 0x178   : > { %v716_v17 = vmul.f32 0.01, %v673_v15  ;;  %vm700_vm8 = vcmp.ge.f32.partialorder %v673_v15, 0.0 }
 0x17a   : > { %v732_v20 = vsel %vm700_vm8, %v673_v15, %v716_v17  ;;  %v1372_v15 = vor.u32 %v1452_v12, %v1369_v14 }
 0x17c   : > { %1077 = vmatpush.bf16.msrb.mxu0 %v1372_v15 }
 0x17d   : > { %v674_v16 = vpop.f32.mrf.mxu1 }
 0x17e   : > { %v675_v18 = vadd.f32 %v1667_v25, %v674_v16 }
 0x180   : > { %v717_v19 = vmul.f32 0.01, %v675_v18  ;;  %vm701_vm9 = vcmp.ge.f32.partialorder %v675_v18, 0.0 }
 0x182   : > { %v733_v21 = vsel %vm701_vm9, %v675_v18, %v717_v19  ;;  %v1359_v19 = vld [vmem:[%s1873_s7 + $0x10] sm:$0xf] }
 0x183   : > { %v744_v22 = vpack.c.bf16 %v733_v21, %v732_v20  ;;  %v1451_v20 = vld [vmem:[%s1873_s7 + $0x14] sm:$0xf0]  ;;  %v1450_v21 = vld [vmem:[%s1873_s7 + $0x14] sm:$0xf] }
 0x185   : > { %v677_v23 = vpop.f32.mrf.mxu1  ;;  %844 = vmatmul.bf16.gmra.mxu2 %v744_v22  ;;  %v1360_v22 = vor.u32 %v1451_v20, %v1359_v19 }
 0x186   : > { %v678_v24 = vadd.f32 %v1667_v25, %v677_v23  ;;  %v1361_v23 = vld [vmem:[%s1873_s7 + $0x18] sm:$0xf0] }
 0x187   : > { %1029 = vmatpush.bf16.msrb.mxu3 %v1360_v22 }
 0x188   : > { %v718_v27 = vmul.f32 0.01, %v678_v24  ;;  %vm702_vm10 = vcmp.ge.f32.partialorder %v678_v24, 0.0 }
 0x18a   : > { %v734_v30 = vsel %vm702_vm10, %v678_v24, %v718_v27  ;;  %v1364_v24 = vor.u32 %v1450_v21, %v1361_v23 }
 0x18c   : > { %1078 = vmatpush.bf16.msrb.mxu0 %v1364_v24 }
 0x18d   : > { %v679_v26 = vpop.f32.mrf.mxu1 }
 0x18e   : > { %v680_v28 = vadd.f32 %v1667_v25, %v679_v26 }
 0x190   : > { %v719_v29 = vmul.f32 0.01, %v680_v28  ;;  %vm703_vm11 = vcmp.ge.f32.partialorder %v680_v28, 0.0 }
 0x192   : > { %v735_v31 = vsel %vm703_vm11, %v680_v28, %v719_v29  ;;  %v1351_v28 = vld [vmem:[%s1873_s7] sm:$0xf]  ;;  %v1449_v29 = vld [vmem:[%s1873_s7 + $0x4] sm:$0xf0] }
 0x193   : > { %v745_v32 = vpack.c.bf16 %v735_v31, %v734_v30  ;;  %v1448_v30 = vld [vmem:[%s1873_s7 + $0x4] sm:$0xf] }
 0x195   : > { %v682_v33 = vpop.f32.mrf.mxu1  ;;  %849 = vmatmul.bf16.gmra.mxu2 %v745_v32  ;;  %v1352_v32 = vor.u32 %v1449_v29, %v1351_v28 }
 0x196   : > { %v683_v48 = vadd.f32 %v1667_v25, %v682_v33  ;;  %v1353_v33 = vld [vmem:[%s1873_s7 + $0x8] sm:$0xf0] }
 0x197   : > { %v1356_v34 = vor.u32 %v1448_v30, %v1353_v33  ;;  %1030 = vmatpush.bf16.msrb.mxu3 %v1352_v32 }
 0x198   : > { %v720_v56 = vmul.f32 0.01, %v683_v48  ;;  %vm704_vm12 = vcmp.ge.f32.partialorder %v683_v48, 0.0 }
 0x199   : > { %1079 = vmatpush.bf16.msrb.mxu0 %v1356_v34 }
 0x19a   : > { %v736_v63 = vsel %vm704_vm12, %v683_v48, %v720_v56 }
 0x19d   : > { %v684_v52 = vpop.f32.mrf.mxu1 }
 0x19e   : > { %v685_v57 = vadd.f32 %v1667_v25, %v684_v52 }
 0x1a0   : > { %v721_v60 = vmul.f32 0.01, %v685_v57  ;;  %vm705_vm13 = vcmp.ge.f32.partialorder %v685_v57, 0.0 }
 0x1a2   : > { %v737_v0 = vsel %vm705_vm13, %v685_v57, %v721_v60 }
 0x1a3   : > { %v746_v1 = vpack.c.bf16 %v737_v0, %v736_v63 }
 0x1a5   : > { %v687_v2 = vpop.f32.mrf.mxu1  ;;  %854 = vmatmul.bf16.gmra.mxu2 %v746_v1 }
 0x1a6   : > { %v688_v9 = vadd.f32 %v1667_v25, %v687_v2 }
 0x1a8   : > { %v722_v16 = vmul.f32 0.01, %v688_v9  ;;  %vm706_vm14 = vcmp.ge.f32.partialorder %v688_v9, 0.0 }
 0x1aa   : > { %v738_v26 = vsel %vm706_vm14, %v688_v9, %v722_v16 }
 0x1ad   : > { %v689_v17 = vpop.f32.mrf.mxu1 }
 0x1ae   : > { %v690_v18 = vadd.f32 %v1667_v25, %v689_v17 }
 0x1b0   : > { %v723_v25 = vmul.f32 0.01, %v690_v18  ;;  %vm707_vm15 = vcmp.ge.f32.partialorder %v690_v18, 0.0 }
 0x1b2   : > { %v739_v27 = vsel %vm707_vm15, %v690_v18, %v723_v25 }
 0x1b3   : > { %v747_v31 = vpack.c.bf16 %v739_v27, %v738_v26 }
 0x1b5   : > { %859 = vmatmul.bf16.gmra.mxu2 %v747_v31 }
 0x1c8   : > { %v825_v35 = vpop.f32.mrf.mxu2 }
 0x1c9   : > { %v826_v37 = vadd.f32 %v1784_v36, %v825_v35 }
 0x1cb   : > { %v881_v39 = vmul.f32 0.01, %v826_v37  ;;  %vm865_vm0 = vcmp.ge.f32.partialorder %v826_v37, 0.0 }
 0x1cd   : > { %v897_v42 = vsel %vm865_vm0, %v826_v37, %v881_v39 }
 0x1d0   : > { %v827_v38 = vpop.f32.mrf.mxu2 }
 0x1d1   : > { %v828_v40 = vadd.f32 %v1784_v36, %v827_v38 }
 0x1d3   : > { %vm866_vm1 = vcmp.ge.f32.partialorder %v828_v40, 0.0  ;;  %v882_v41 = vmul.f32 0.01, %v828_v40 }
 0x1d5   : > { %v898_v43 = vsel %vm866_vm1, %v828_v40, %v882_v41 }
 0x1d6   : > { %v913_v44 = vpack.c.bf16 %v898_v43, %v897_v42 }
 0x1d8   : > { %v830_v45 = vpop.f32.mrf.mxu2  ;;  %1031 = vmatmul.bf16.vlgmr.msrb.gmra.mxu3 %v913_v44  ;;  %1080 = vmatmul.bf16.vlgmr.msrb.gmra.mxu0 %v913_v44 }
 0x1d9   : > { %v831_v46 = vadd.f32 %v1784_v36, %v830_v45  ;;  %v937_v45 = vld [vmem:[%s1874_s8] sm:$0x3] }
 0x1db   : > { %v883_v48 = vmul.f32 0.01, %v831_v46  ;;  %vm867_vm2 = vcmp.ge.f32.partialorder %v831_v46, 0.0 }
 0x1dd   : > { %v899_v51 = vsel %vm867_vm2, %v831_v46, %v883_v48  ;;  %v1807_v48 = vperm.slane %v937_v45, 0 }
 0x1e0   : > { %v832_v47 = vpop.f32.mrf.mxu2 }
 0x1e1   : > { %v833_v49 = vadd.f32 %v1784_v36, %v832_v47  ;;  %v1805_v47 = vperm.slane %v937_v45, 1 }
 0x1e3   : > { %v884_v50 = vmul.f32 0.01, %v833_v49  ;;  %vm868_vm3 = vcmp.ge.f32.partialorder %v833_v49, 0.0 }
 0x1e5   : > { %v900_v52 = vsel %vm868_vm3, %v833_v49, %v884_v50 }
 0x1e6   : > { %v914_v53 = vpack.c.bf16 %v900_v52, %v899_v51 }
 0x1e8   : > { %v835_v54 = vpop.f32.mrf.mxu2  ;;  %1036 = vmatmul.bf16.gmra.mxu3 %v914_v53  ;;  %1085 = vmatmul.bf16.gmra.mxu0 %v914_v53 }
 0x1e9   : > { %v836_v55 = vadd.f32 %v1784_v36, %v835_v54 }
 0x1eb   : > { %v885_v57 = vmul.f32 0.01, %v836_v55  ;;  %vm869_vm4 = vcmp.ge.f32.partialorder %v836_v55, 0.0 }
 0x1ed   : > { %v901_v60 = vsel %vm869_vm4, %v836_v55, %v885_v57 }
 0x1f0   : > { %v837_v56 = vpop.f32.mrf.mxu2 }
 0x1f1   : > { %v838_v58 = vadd.f32 %v1784_v36, %v837_v56 }
 0x1f3   : > { %v886_v59 = vmul.f32 0.01, %v838_v58  ;;  %vm870_vm5 = vcmp.ge.f32.partialorder %v838_v58, 0.0 }
 0x1f5   : > { %v902_v61 = vsel %vm870_vm5, %v838_v58, %v886_v59 }
 0x1f6   : > { %v915_v62 = vpack.c.bf16 %v902_v61, %v901_v60 }
 0x1f8   : > { %v840_v63 = vpop.f32.mrf.mxu2  ;;  %1041 = vmatmul.bf16.gmra.mxu3 %v915_v62  ;;  %1090 = vmatmul.bf16.gmra.mxu0 %v915_v62 }
 0x1f9   : > { %v841_v0 = vadd.f32 %v1784_v36, %v840_v63 }
 0x1fb   : > { %v887_v2 = vmul.f32 0.01, %v841_v0  ;;  %vm871_vm6 = vcmp.ge.f32.partialorder %v841_v0, 0.0 }
 0x1fd   : > { %v903_v5 = vsel %vm871_vm6, %v841_v0, %v887_v2 }
 0x200   : > { %v842_v1 = vpop.f32.mrf.mxu2 }
 0x201   : > { %v843_v3 = vadd.f32 %v1784_v36, %v842_v1 }
 0x203   : > { %v888_v4 = vmul.f32 0.01, %v843_v3  ;;  %vm872_vm7 = vcmp.ge.f32.partialorder %v843_v3, 0.0 }
 0x205   : > { %v904_v6 = vsel %vm872_vm7, %v843_v3, %v888_v4 }
 0x206   : > { %v916_v7 = vpack.c.bf16 %v904_v6, %v903_v5 }
 0x208   : > { %v845_v8 = vpop.f32.mrf.mxu2  ;;  %1046 = vmatmul.bf16.gmra.mxu3 %v916_v7  ;;  %1095 = vmatmul.bf16.gmra.mxu0 %v916_v7 }
 0x209   : > { %v846_v9 = vadd.f32 %v1784_v36, %v845_v8 }
 0x20b   : > { %v889_v11 = vmul.f32 0.01, %v846_v9  ;;  %vm873_vm8 = vcmp.ge.f32.partialorder %v846_v9, 0.0 }
 0x20d   : > { %v905_v14 = vsel %vm873_vm8, %v846_v9, %v889_v11 }
 0x210   : > { %v847_v10 = vpop.f32.mrf.mxu2 }
 0x211   : > { %v848_v12 = vadd.f32 %v1784_v36, %v847_v10 }
 0x213   : > { %v890_v13 = vmul.f32 0.01, %v848_v12  ;;  %vm874_vm9 = vcmp.ge.f32.partialorder %v848_v12, 0.0 }
 0x215   : > { %v906_v15 = vsel %vm874_vm9, %v848_v12, %v890_v13 }
 0x216   : > { %v917_v16 = vpack.c.bf16 %v906_v15, %v905_v14 }
 0x218   : > { %v850_v17 = vpop.f32.mrf.mxu2  ;;  %1051 = vmatmul.bf16.gmra.mxu3 %v917_v16  ;;  %1100 = vmatmul.bf16.gmra.mxu0 %v917_v16 }
 0x219   : > { %v851_v18 = vadd.f32 %v1784_v36, %v850_v17 }
 0x21b   : > { %v891_v20 = vmul.f32 0.01, %v851_v18  ;;  %vm875_vm10 = vcmp.ge.f32.partialorder %v851_v18, 0.0 }
 0x21d   : > { %v907_v23 = vsel %vm875_vm10, %v851_v18, %v891_v20 }
 0x220   : > { %v852_v19 = vpop.f32.mrf.mxu2 }
 0x221   : > { %v853_v21 = vadd.f32 %v1784_v36, %v852_v19 }
 0x223   : > { %v892_v22 = vmul.f32 0.01, %v853_v21  ;;  %vm876_vm11 = vcmp.ge.f32.partialorder %v853_v21, 0.0 }
 0x225   : > { %v908_v25 = vsel %vm876_vm11, %v853_v21, %v892_v22 }
 0x226   : > { %v918_v24 = vpack.c.bf16 %v908_v25, %v907_v23 }
 0x228   : > { %v855_v26 = vpop.f32.mrf.mxu2  ;;  %1056 = vmatmul.bf16.gmra.mxu3 %v918_v24  ;;  %1105 = vmatmul.bf16.gmra.mxu0 %v918_v24 }
 0x229   : > { %v856_v27 = vadd.f32 %v1784_v36, %v855_v26 }
 0x22b   : > { %v893_v29 = vmul.f32 0.01, %v856_v27  ;;  %vm877_vm12 = vcmp.ge.f32.partialorder %v856_v27, 0.0 }
 0x22d   : > { %v909_v32 = vsel %vm877_vm12, %v856_v27, %v893_v29 }
 0x230   : > { %v857_v28 = vpop.f32.mrf.mxu2 }
 0x231   : > { %v858_v30 = vadd.f32 %v1784_v36, %v857_v28 }
 0x233   : > { %v894_v31 = vmul.f32 0.01, %v858_v30  ;;  %vm878_vm13 = vcmp.ge.f32.partialorder %v858_v30, 0.0 }
 0x235   : > { %v910_v33 = vsel %vm878_vm13, %v858_v30, %v894_v31 }
 0x236   : > { %v919_v34 = vpack.c.bf16 %v910_v33, %v909_v32 }
 0x238   : > { %v860_v35 = vpop.f32.mrf.mxu2  ;;  %1061 = vmatmul.bf16.gmra.mxu3 %v919_v34  ;;  %1110 = vmatmul.bf16.gmra.mxu0 %v919_v34 }
 0x239   : > { %v861_v37 = vadd.f32 %v1784_v36, %v860_v35 }
 0x23b   : > { %v895_v39 = vmul.f32 0.01, %v861_v37  ;;  %vm879_vm14 = vcmp.ge.f32.partialorder %v861_v37, 0.0 }
 0x23d   : > { %v911_v42 = vsel %vm879_vm14, %v861_v37, %v895_v39 }
 0x240   : > { %v862_v38 = vpop.f32.mrf.mxu2 }
 0x241   : > { %v863_v40 = vadd.f32 %v1784_v36, %v862_v38 }
 0x243   : > { %v896_v41 = vmul.f32 0.01, %v863_v40  ;;  %vm880_vm15 = vcmp.ge.f32.partialorder %v863_v40, 0.0 }
 0x245   : > { %v912_v43 = vsel %vm880_vm15, %v863_v40, %v896_v41 }
 0x246   : > { %v920_v44 = vpack.c.bf16 %v912_v43, %v911_v42 }
 0x248   : > { %1066 = vmatmul.bf16.gmra.mxu3 %v920_v44  ;;  %1115 = vmatmul.bf16.gmra.mxu0 %v920_v44 }
 0x255   : > { %v1081_v46 = vpop.f32.mrf.mxu0 }
 0x256   : > { %v1082_v36 = vadd.f32 %v1081_v46, %v1805_v47 }
 0x25b   : > { %v1032_v49 = vpop.f32.mrf.mxu3 }
 0x25c   : > { %v1033_v50 = vadd.f32 %v1032_v49, %v1807_v48 }
 0x25d   : > { %v1083_v51 = vpop.f32.mrf.mxu0 }
 0x25e   : > { %v1121_v52 = vpack.c.bf16 %v1082_v36, %v1033_v50  ;;  %v1084_v54 = vadd.f32 %v1083_v51, %v1805_v47 }
 0x260   : > { %1137 = vst [vmem:[%s1815_s25] sm:$0xff] %v1121_v52 }
 0x263   : > { %v1034_v53 = vpop.f32.mrf.mxu3 }
 0x264   : > { %v1035_v55 = vadd.f32 %v1034_v53, %v1807_v48 }
 0x265   : > { %v1086_v56 = vpop.f32.mrf.mxu0 }
 0x266   : > { %v1122_v57 = vpack.c.bf16 %v1084_v54, %v1035_v55  ;;  %v1087_v59 = vadd.f32 %v1086_v56, %v1805_v47 }
 0x268   : > { %1138 = vst [vmem:[%s1815_s25 + $0x8] sm:$0xff] %v1122_v57 }
 0x26b   : > { %v1037_v58 = vpop.f32.mrf.mxu3 }
 0x26c   : > { %v1038_v60 = vadd.f32 %v1037_v58, %v1807_v48 }
 0x26d   : > { %v1088_v61 = vpop.f32.mrf.mxu0 }
 0x26e   : > { %v1123_v62 = vpack.c.bf16 %v1087_v59, %v1038_v60  ;;  %v1089_v0 = vadd.f32 %v1088_v61, %v1805_v47 }
 0x270   : > { %1139 = vst [vmem:[%s1815_s25 + $0x10] sm:$0xff] %v1123_v62 }
 0x273   : > { %v1039_v63 = vpop.f32.mrf.mxu3 }
 0x274   : > { %v1040_v1 = vadd.f32 %v1039_v63, %v1807_v48 }
 0x275   : > { %v1091_v2 = vpop.f32.mrf.mxu0 }
 0x276   : > { %v1124_v3 = vpack.c.bf16 %v1089_v0, %v1040_v1  ;;  %v1092_v5 = vadd.f32 %v1091_v2, %v1805_v47 }
 0x278   : > { %1140 = vst [vmem:[%s1815_s25 + $0x18] sm:$0xff] %v1124_v3 }
 0x27b   : > { %v1042_v4 = vpop.f32.mrf.mxu3 }
 0x27c   : > { %v1043_v6 = vadd.f32 %v1042_v4, %v1807_v48 }
 0x27d   : > { %v1093_v7 = vpop.f32.mrf.mxu0 }
 0x27e   : > { %v1125_v8 = vpack.c.bf16 %v1092_v5, %v1043_v6  ;;  %v1094_v10 = vadd.f32 %v1093_v7, %v1805_v47 }
 0x280   : > { %1141 = vst [vmem:[%s1815_s25 + $0x20] sm:$0xff] %v1125_v8 }
 0x283   : > { %v1044_v9 = vpop.f32.mrf.mxu3 }
 0x284   : > { %v1045_v11 = vadd.f32 %v1044_v9, %v1807_v48 }
 0x285   : > { %v1096_v12 = vpop.f32.mrf.mxu0 }
 0x286   : > { %v1126_v13 = vpack.c.bf16 %v1094_v10, %v1045_v11  ;;  %v1097_v15 = vadd.f32 %v1096_v12, %v1805_v47 }
 0x288   : > { %1142 = vst [vmem:[%s1815_s25 + $0x28] sm:$0xff] %v1126_v13 }
 0x28b   : > { %v1047_v14 = vpop.f32.mrf.mxu3 }
 0x28c   : > { %v1048_v16 = vadd.f32 %v1047_v14, %v1807_v48 }
 0x28d   : > { %v1098_v17 = vpop.f32.mrf.mxu0 }
 0x28e   : > { %v1127_v18 = vpack.c.bf16 %v1097_v15, %v1048_v16  ;;  %v1099_v20 = vadd.f32 %v1098_v17, %v1805_v47 }
 0x290   : > { %1143 = vst [vmem:[%s1815_s25 + $0x30] sm:$0xff] %v1127_v18 }
 0x293   : > { %v1049_v19 = vpop.f32.mrf.mxu3 }
 0x294   : > { %v1050_v21 = vadd.f32 %v1049_v19, %v1807_v48 }
 0x295   : > { %v1101_v22 = vpop.f32.mrf.mxu0 }
 0x296   : > { %v1128_v23 = vpack.c.bf16 %v1099_v20, %v1050_v21  ;;  %v1102_v24 = vadd.f32 %v1101_v22, %v1805_v47 }
 0x298   : > { %1144 = vst [vmem:[%s1815_s25 + $0x38] sm:$0xff] %v1128_v23 }
 0x29b   : > { %v1052_v25 = vpop.f32.mrf.mxu3 }
 0x29c   : > { %v1053_v26 = vadd.f32 %v1052_v25, %v1807_v48 }
 0x29d   : > { %v1103_v27 = vpop.f32.mrf.mxu0 }
 0x29e   : > { %v1129_v28 = vpack.c.bf16 %v1102_v24, %v1053_v26  ;;  %v1104_v30 = vadd.f32 %v1103_v27, %v1805_v47 }
 0x2a0   : > { %1145 = vst [vmem:[%s1815_s25 + $0x40] sm:$0xff] %v1129_v28 }
 0x2a3   : > { %v1054_v29 = vpop.f32.mrf.mxu3 }
 0x2a4   : > { %v1055_v31 = vadd.f32 %v1054_v29, %v1807_v48 }
 0x2a5   : > { %v1106_v32 = vpop.f32.mrf.mxu0 }
 0x2a6   : > { %v1130_v33 = vpack.c.bf16 %v1104_v30, %v1055_v31  ;;  %v1107_v35 = vadd.f32 %v1106_v32, %v1805_v47 }
 0x2a8   : > { %1146 = vst [vmem:[%s1815_s25 + $0x48] sm:$0xff] %v1130_v33 }
 0x2ab   : > { %v1057_v34 = vpop.f32.mrf.mxu3 }
 0x2ac   : > { %v1058_v37 = vadd.f32 %v1057_v34, %v1807_v48 }
 0x2ad   : > { %v1108_v38 = vpop.f32.mrf.mxu0 }
 0x2ae   : > { %v1131_v39 = vpack.c.bf16 %v1107_v35, %v1058_v37  ;;  %v1109_v41 = vadd.f32 %v1108_v38, %v1805_v47 }
 0x2b0   : > { %1147 = vst [vmem:[%s1815_s25 + $0x50] sm:$0xff] %v1131_v39 }
 0x2b3   : > { %v1059_v40 = vpop.f32.mrf.mxu3 }
 0x2b4   : > { %v1060_v42 = vadd.f32 %v1059_v40, %v1807_v48 }
 0x2b5   : > { %v1111_v43 = vpop.f32.mrf.mxu0 }
 0x2b6   : > { %v1132_v44 = vpack.c.bf16 %v1109_v41, %v1060_v42  ;;  %v1112_v46 = vadd.f32 %v1111_v43, %v1805_v47 }
 0x2b8   : > { %1148 = vst [vmem:[%s1815_s25 + $0x58] sm:$0xff] %v1132_v44 }
 0x2bb   : > { %v1062_v45 = vpop.f32.mrf.mxu3 }
 0x2bc   : > { %v1063_v49 = vadd.f32 %v1062_v45, %v1807_v48 }
 0x2bd   : > { %v1113_v36 = vpop.f32.mrf.mxu0 }
 0x2be   : > { %v1133_v50 = vpack.c.bf16 %v1112_v46, %v1063_v49  ;;  %v1114_v52 = vadd.f32 %v1113_v36, %v1805_v47 }
 0x2c0   : > { %1149 = vst [vmem:[%s1815_s25 + $0x60] sm:$0xff] %v1133_v50 }
 0x2c3   : > { %v1064_v51 = vpop.f32.mrf.mxu3 }
 0x2c4   : > { %v1065_v53 = vadd.f32 %v1064_v51, %v1807_v48 }
 0x2c5   : > { %v1116_v55 = vpop.f32.mrf.mxu0 }
 0x2c6   : > { %v1134_v54 = vpack.c.bf16 %v1114_v52, %v1065_v53  ;;  %v1117_v57 = vadd.f32 %v1116_v55, %v1805_v47 }
 0x2c8   : > { %1150 = vst [vmem:[%s1815_s25 + $0x68] sm:$0xff] %v1134_v54 }
 0x2cb   : > { %v1067_v56 = vpop.f32.mrf.mxu3 }
 0x2cc   : > { %v1068_v58 = vadd.f32 %v1067_v56, %v1807_v48 }
 0x2cd   : > { %v1118_v60 = vpop.f32.mrf.mxu0 }
 0x2ce   : > { %v1135_v59 = vpack.c.bf16 %v1117_v57, %v1068_v58  ;;  %v1119_v62 = vadd.f32 %v1118_v60, %v1805_v47 }
 0x2d0   : > { %1151 = vst [vmem:[%s1815_s25 + $0x70] sm:$0xff] %v1135_v59 }
 0x2d3   : > { %v1069_v61 = vpop.f32.mrf.mxu3 }
 0x2d4   : > { %v1070_v63 = vadd.f32 %v1069_v61, %v1807_v48 }
 0x2d6   : > { %v1136_v0 = vpack.c.bf16 %v1119_v62, %v1070_v63 }
 0x2d8   : > { %1152 = vst [vmem:[%s1815_s25 + $0x78] sm:$0xff] %v1136_v0 }
 0x2d9 PF: > { %s19_s30 = sadd.s32 1, %s1505_s30  }
 0x2da   : > { %p16_p4 = scmp.ge.s32.totalorder %s19_s30, 4  }
 0x2dc   :  { %18 = sbr.rel (!%p16_p4) target bundleno = 1 (0x1), region = 86 }

// kernel: teecnet_forward_pallas.14
= control target key start
LH: loop header
LB: loop body
LE: loop exit
PB: predicated region body
PF: predicated region fallthrough
CT: control target
= control target key end

     0   :  { %s1146_s15 = smov 0   ;;  %s1366_s0 = inlined_call_operand.vmem [shape: bf16[256,128], index: 0, kind: input, shape index: {}]   ;;  %s1367_s1 = inlined_call_operand.vmem [shape: bf16[256,256], index: 1, kind: input, shape index: {}]   ;;  %s1368_s2 = inlined_call_operand.vmem [shape: bf16[128,256], index: 2, kind: input, shape index: {}]   ;;  %s1369_s3 = inlined_call_operand.vmem [shape: bf16[256,128], index: 3, kind: input, shape index: {}]   ;;  %s1370_s4 = inlined_call_operand.vmem [shape: f32[256,128], index: 4, kind: output, shape index: {}]  }
   0x1 LB: > { %s890_s16 = sadd.s32 4294967295, %s1119_s15   ;;  %p894_p0 = scmp.ge.s32.totalorder %s1119_s15, 1  ;;  %s1119_s15 = sphi %s1146_s15, %s14_s15  }
   0x2   : > { %p175_p1 = scmp.lt.s32.totalorder %s1119_s15, 3 }
   0x4   : > { %p176_p2 = pnand %p894_p0, %p175_p1 }
   0x5   : > { %s895_s7 = sshll.u32 (!%p176_p2), %s890_s16, 4 }
   0x6   : > { %179 = sbr.rel (%p176_p2) target bundleno = 439 (0x1b7), region = 36  ;;  %p208_p3 = scmp.lt.s32.totalorder (!%p176_p2), %s895_s7, 31 }
   0xb   : > { %v992_v0 = vld [vmem:[%s1368_s2 + $0x70] sm:$0xf]  ;;  %v1088_v1 = vld [vmem:[%s1368_s2 + $0x74] sm:$0xf0]  ;;  %v1087_v2 = vld [vmem:[%s1368_s2 + $0x74] sm:$0xf] }
   0xc   : > { %v993_v3 = vor.u32 %v1088_v1, %v992_v0  ;;  %v994_v4 = vld [vmem:[%s1368_s2 + $0x78] sm:$0xf0]  ;;  %v984_v5 = vld [vmem:[%s1368_s2 + $0x60] sm:$0xf]  ;;  %v1086_v6 = vld [vmem:[%s1368_s2 + $0x64] sm:$0xf0] }
   0xd   : > { %v997_v7 = vor.u32 %v1087_v2, %v994_v4  ;;  %v1085_v8 = vld [vmem:[%s1368_s2 + $0x64] sm:$0xf]  ;;  %v986_v9 = vld [vmem:[%s1368_s2 + $0x68] sm:$0xf0]  ;;  %v985_v10 = vor.u32 %v1086_v6, %v984_v5  ;;  %v976_v12 = vld [vmem:[%s1368_s2 + $0x50] sm:$0xf] }
   0xe   : > { %386 = vmatpush.bf16.msra.mxu0 %v993_v3  ;;  %v989_v11 = vor.u32 %v1085_v8, %v986_v9  ;;  %v1084_v13 = vld [vmem:[%s1368_s2 + $0x54] sm:$0xf0]  ;;  %v1083_v14 = vld [vmem:[%s1368_s2 + $0x54] sm:$0xf]  ;;  %v978_v15 = vld [vmem:[%s1368_s2 + $0x58] sm:$0xf0] }
   0xf   : > { %435 = vmatpush.bf16.msra.mxu1 %v997_v7  ;;  %v977_v16 = vor.u32 %v1084_v13, %v976_v12  ;;  %v981_v17 = vor.u32 %v1083_v14, %v978_v15  ;;  %v968_v18 = vld [vmem:[%s1368_s2 + $0x40] sm:$0xf]  ;;  %v1082_v19 = vld [vmem:[%s1368_s2 + $0x44] sm:$0xf0]  ;;  %v1081_v20 = vld [vmem:[%s1368_s2 + $0x44] sm:$0xf] }
  0x10   : > { %v970_v21 = vld [vmem:[%s1368_s2 + $0x48] sm:$0xf0]  ;;  %v969_v22 = vor.u32 %v1082_v19, %v968_v18  ;;  %v960_v24 = vld [vmem:[%s1368_s2 + $0x30] sm:$0xf]  ;;  %v1080_v25 = vld [vmem:[%s1368_s2 + $0x34] sm:$0xf0] }
  0x11   : > { %v973_v23 = vor.u32 %v1081_v20, %v970_v21  ;;  %v1079_v26 = vld [vmem:[%s1368_s2 + $0x34] sm:$0xf]  ;;  %v962_v27 = vld [vmem:[%s1368_s2 + $0x38] sm:$0xf0]  ;;  %v961_v28 = vor.u32 %v1080_v25, %v960_v24  ;;  %v952_v30 = vld [vmem:[%s1368_s2 + $0x20] sm:$0xf] }
  0x12   : > { %387 = vmatpush.bf16.msra.mxu0 %v985_v10  ;;  %v965_v29 = vor.u32 %v1079_v26, %v962_v27  ;;  %v1078_v31 = vld [vmem:[%s1368_s2 + $0x24] sm:$0xf0]  ;;  %v1077_v32 = vld [vmem:[%s1368_s2 + $0x24] sm:$0xf]  ;;  %v954_v33 = vld [vmem:[%s1368_s2 + $0x28] sm:$0xf0] }
  0x13   : > { %436 = vmatpush.bf16.msra.mxu1 %v989_v11  ;;  %v953_v34 = vor.u32 %v1078_v31, %v952_v30  ;;  %v957_v35 = vor.u32 %v1077_v32, %v954_v33  ;;  %v944_v36 = vld [vmem:[%s1368_s2 + $0x10] sm:$0xf]  ;;  %v1076_v37 = vld [vmem:[%s1368_s2 + $0x14] sm:$0xf0]  ;;  %s1372_s7 = smov (!%p208_p3, %s895_s7), 31  ;;  %v1094_v58 = vld [vmem:[%s1369_s3 + $0x28] sm:$0xff] }
  0x14   : > { %v1075_v38 = vld [vmem:[%s1368_s2 + $0x14] sm:$0xf]  ;;  %v946_v39 = vld [vmem:[%s1368_s2 + $0x18] sm:$0xf0]  ;;  %v945_v40 = vor.u32 %v1076_v37, %v944_v36  ;;  %v936_v42 = vld [vmem:[%s1368_s2] sm:$0xf] }
  0x15   : > { %v949_v41 = vor.u32 %v1075_v38, %v946_v39  ;;  %v1074_v43 = vld [vmem:[%s1368_s2 + $0x4] sm:$0xf0]  ;;  %s896_s29 = sshll.u32 %s1372_s7, 2  ;;  %v1073_v44 = vld [vmem:[%s1368_s2 + $0x4] sm:$0xf]  ;;  %v1096_v53 = vld [vmem:[%s1369_s3 + $0x38] sm:$0xff] }
  0x16   : > { %388 = vmatpush.bf16.msra.mxu0 %v977_v16  ;;  %v938_v45 = vld [vmem:[%s1368_s2 + $0x8] sm:$0xf0]  ;;  %v937_v46 = vor.u32 %v1074_v43, %v936_v42  ;;  %s1258_s11 = scalar_lea.vmem %s1366_s0, %s896_s29  ;;  %v1104_v54 = vld [vmem:[%s1369_s3 + $0x78] sm:$0xff]  ;;  %708 = vmatpush.bf16.msra.mxu2 %v1096_v53  ;;  %v1095_v55 = vld [vmem:[%s1369_s3 + $0x30] sm:$0xff]  ;;  %s1064_s22 = sshll.u32 %s1372_s7, 3 }
  0x17   : > { %437 = vmatpush.bf16.msra.mxu1 %v981_v17  ;;  %v941_v47 = vor.u32 %v1073_v44, %v938_v45  ;;  %v1065_v48 = vld [vmem:[%s1258_s11] sm:$0xff]  ;;  %v1066_v49 = vld [vmem:[%s1258_s11 + $0x8] sm:$0xff]  ;;  %v1067_v50 = vld [vmem:[%s1258_s11 + $0x10] sm:$0xff]  ;;  %757 = vmatpush.bf16.msra.mxu3 %v1104_v54  ;;  %s1322_s25 = scalar_lea.vmem %s1367_s1, %s1064_s22  ;;  %s1345_s27 = scalar_lea.vmem %s1370_s4, %s1064_s22 }
  0x18   : > { %v1068_v51 = vld [vmem:[%s1258_s11 + $0x18] sm:$0xff]  ;;  %v1069_v52 = vld [vmem:[%s1258_s11 + $0x20] sm:$0xff]  ;;  %v1103_v56 = vld [vmem:[%s1369_s3 + $0x70] sm:$0xff] }
  0x19   : > { %v1070_v57 = vld [vmem:[%s1258_s11 + $0x28] sm:$0xff]  ;;  %v1093_v60 = vld [vmem:[%s1369_s3 + $0x20] sm:$0xff]  ;;  %v1092_v62 = vld [vmem:[%s1369_s3 + $0x18] sm:$0xff] }
  0x1a   : > { %389 = vmatpush.bf16.msra.mxu0 %v969_v22  ;;  %709 = vmatpush.bf16.msra.mxu2 %v1095_v55  ;;  %v1102_v59 = vld [vmem:[%s1369_s3 + $0x68] sm:$0xff]  ;;  %v1101_v61 = vld [vmem:[%s1369_s3 + $0x60] sm:$0xff]  ;;  %v1100_v63 = vld [vmem:[%s1369_s3 + $0x58] sm:$0xff] }
  0x1b   : > { %438 = vmatpush.bf16.msra.mxu1 %v973_v23  ;;  %758 = vmatpush.bf16.msra.mxu3 %v1103_v56  ;;  %v1071_v0 = vld [vmem:[%s1258_s11 + $0x30] sm:$0xff]  ;;  %v1090_v3 = vld [vmem:[%s1369_s3 + $0x8] sm:$0xff]  ;;  %v1089_v5 = vld [vmem:[%s1369_s3] sm:$0xff] }
  0x1c   : > { %v1091_v1 = vld [vmem:[%s1369_s3 + $0x10] sm:$0xff]  ;;  %v1098_v4 = vld [vmem:[%s1369_s3 + $0x48] sm:$0xff]  ;;  %v1097_v6 = vld [vmem:[%s1369_s3 + $0x40] sm:$0xff] }
  0x1d   : > { %v1099_v2 = vld [vmem:[%s1369_s3 + $0x50] sm:$0xff]  ;;  %v1072_v7 = vld [vmem:[%s1258_s11 + $0x38] sm:$0xff]  ;;  %v484_v10 = vld [vmem:[%s1322_s25] sm:$0xff] }
  0x1e   : > { %390 = vmatpush.bf16.msra.mxu0 %v961_v28  ;;  %710 = vmatpush.bf16.msra.mxu2 %v1094_v58  ;;  %v485_v11 = vld [vmem:[%s1322_s25 + $0x8] sm:$0xff]  ;;  %v500_v12 = vunpack.c.l.bf16 %v484_v10  ;;  %v501_v14 = vunpack.c.h.bf16 %v484_v10  ;;  %v486_v26 = vld [vmem:[%s1322_s25 + $0x10] sm:$0xff]  ;;  %v487_v27 = vld [vmem:[%s1322_s25 + $0x18] sm:$0xff] }
  0x1f   : > { %439 = vmatpush.bf16.msra.mxu1 %v965_v29  ;;  %759 = vmatpush.bf16.msra.mxu3 %v1102_v59  ;;  %v502_v13 = vunpack.c.l.bf16 %v485_v11  ;;  %v503_v15 = vunpack.c.h.bf16 %v485_v11  ;;  %v504_v28 = vunpack.c.l.bf16 %v486_v26  ;;  %v506_v29 = vunpack.c.l.bf16 %v487_v27  ;;  %v488_v42 = vld [vmem:[%s1322_s25 + $0x20] sm:$0xff]  ;;  %v489_v43 = vld [vmem:[%s1322_s25 + $0x28] sm:$0xff]  ;;  %v490_v58 = vld [vmem:[%s1322_s25 + $0x30] sm:$0xff] }
  0x20   : > { %v505_v30 = vunpack.c.h.bf16 %v486_v26  ;;  %v507_v31 = vunpack.c.h.bf16 %v487_v27  ;;  %v508_v44 = vunpack.c.l.bf16 %v488_v42  ;;  %v510_v45 = vunpack.c.l.bf16 %v489_v43  ;;  %v491_v59 = vld [vmem:[%s1322_s25 + $0x38] sm:$0xff]  ;;  %v492_v10 = vld [vmem:[%s1322_s25 + $0x40] sm:$0xff]  ;;  %v493_v11 = vld [vmem:[%s1322_s25 + $0x48] sm:$0xff] }
  0x21   : > { %v494_v26 = vld [vmem:[%s1322_s25 + $0x50] sm:$0xff]  ;;  %v495_v27 = vld [vmem:[%s1322_s25 + $0x58] sm:$0xff] }
  0x22   : > { %391 = vmatpush.bf16.msra.mxu0 %v953_v34  ;;  %711 = vmatpush.bf16.msra.mxu2 %v1093_v60  ;;  %v512_v60 = vunpack.c.l.bf16 %v490_v58 }
  0x23   : > { %440 = vmatpush.bf16.msra.mxu1 %v957_v35  ;;  %760 = vmatpush.bf16.msra.mxu3 %v1101_v61  ;;  %v514_v61 = vunpack.c.l.bf16 %v491_v59 }
  0x26   : > { %392 = vmatpush.bf16.msra.mxu0 %v945_v40  ;;  %712 = vmatpush.bf16.msra.mxu2 %v1092_v62  ;;  %v513_v62 = vunpack.c.h.bf16 %v490_v58  ;;  %v498_v58 = vld [vmem:[%s1322_s25 + $0x70] sm:$0xff] }
  0x27   : > { %441 = vmatpush.bf16.msra.mxu1 %v949_v41  ;;  %761 = vmatpush.bf16.msra.mxu3 %v1100_v63  ;;  %v515_v63 = vunpack.c.h.bf16 %v491_v59  ;;  %v499_v59 = vld [vmem:[%s1322_s25 + $0x78] sm:$0xff] }
  0x2a   : > { %393 = vmatpush.bf16.msra.mxu0 %v937_v46  ;;  %713 = vmatpush.bf16.msra.mxu2 %v1091_v1  ;;  %v509_v46 = vunpack.c.h.bf16 %v488_v42  ;;  %v496_v42 = vld [vmem:[%s1322_s25 + $0x60] sm:$0xff] }
  0x2b   : > { %442 = vmatpush.bf16.msra.mxu1 %v941_v47  ;;  %762 = vmatpush.bf16.msra.mxu3 %v1099_v2  ;;  %v511_v47 = vunpack.c.h.bf16 %v489_v43  ;;  %v497_v43 = vld [vmem:[%s1322_s25 + $0x68] sm:$0xff] }
  0x2d   : > { %394 = vmatmul.bf16.vlgmr.msra.gmra.mxu0 %v1065_v48 }
  0x2e   : > { %443 = vmatmul.bf16.vlgmr.msra.gmra.mxu1 %v1065_v48  ;;  %714 = vmatpush.bf16.msra.mxu2 %v1090_v3 }
  0x2f   : > { %763 = vmatpush.bf16.msra.mxu3 %v1098_v4 }
  0x32   : > { %715 = vmatpush.bf16.msra.mxu2 %v1089_v5 }
  0x33   : > { %764 = vmatpush.bf16.msra.mxu3 %v1097_v6 }
  0x3d   : > { %399 = vmatmul.bf16.gmra.mxu0 %v1066_v49 }
  0x3e   : > { %448 = vmatmul.bf16.gmra.mxu1 %v1066_v49 }
  0x4d   : > { %404 = vmatmul.bf16.gmra.mxu0 %v1067_v50 }
  0x4e   : > { %453 = vmatmul.bf16.gmra.mxu1 %v1067_v50 }
  0x5d   : > { %409 = vmatmul.bf16.gmra.mxu0 %v1068_v51 }
  0x5e   : > { %458 = vmatmul.bf16.gmra.mxu1 %v1068_v51 }
  0x6d   : > { %414 = vmatmul.bf16.gmra.mxu0 %v1069_v52 }
  0x6e   : > { %463 = vmatmul.bf16.gmra.mxu1 %v1069_v52 }
  0x7d   : > { %419 = vmatmul.bf16.gmra.mxu0 %v1070_v57 }
  0x7e   : > { %468 = vmatmul.bf16.gmra.mxu1 %v1070_v57 }
  0x8d   : > { %424 = vmatmul.bf16.gmra.mxu0 %v1071_v0 }
  0x8e   : > { %473 = vmatmul.bf16.gmra.mxu1 %v1071_v0 }
  0x9d   : > { %429 = vmatmul.bf16.gmra.mxu0 %v1072_v7 }
  0x9e   : > { %478 = vmatmul.bf16.gmra.mxu1 %v1072_v7 }
  0xaa   : > { %v395_v8 = vpop.f32.mrf.mxu0 }
  0xab   : > { %v444_v9 = vpop.f32.mrf.mxu1  ;;  %v532_v17 = vmul.f32 %v500_v12, %v395_v8  ;;  %v516_v12 = vunpack.c.l.bf16 %v492_v10 }
  0xac   : > { %v533_v20 = vmul.f32 %v501_v14, %v444_v9  ;;  %v517_v14 = vunpack.c.h.bf16 %v492_v10 }
  0xb2   : > { %v397_v16 = vpop.f32.mrf.mxu0 }
  0xb3   : > { %v534_v18 = vmul.f32 %v502_v13, %v397_v16  ;;  %v446_v19 = vpop.f32.mrf.mxu1  ;;  %v518_v13 = vunpack.c.l.bf16 %v493_v11 }
  0xb4   : > { %v535_v21 = vmul.f32 %v503_v15, %v446_v19  ;;  %v519_v15 = vunpack.c.h.bf16 %v493_v11 }
  0xb5   : > { %v564_v22 = vpack.c.bf16 %v534_v18, %v532_v17 }
  0xb6   : > { %v565_v23 = vpack.c.bf16 %v535_v21, %v533_v20 }
  0xb7   : > { %716 = vmatmul.bf16.vlgmr.msra.gmra.mxu2 %v564_v22 }
  0xb8   : > { %765 = vmatmul.bf16.vlgmr.msra.gmra.mxu3 %v565_v23 }
  0xba   : > { %v400_v24 = vpop.f32.mrf.mxu0 }
  0xbb   : > { %v449_v25 = vpop.f32.mrf.mxu1  ;;  %v536_v33 = vmul.f32 %v504_v28, %v400_v24  ;;  %v520_v28 = vunpack.c.l.bf16 %v494_v26 }
  0xbc   : > { %v537_v36 = vmul.f32 %v505_v30, %v449_v25  ;;  %v521_v30 = vunpack.c.h.bf16 %v494_v26 }
  0xc2   : > { %v402_v32 = vpop.f32.mrf.mxu0 }
  0xc3   : > { %v538_v34 = vmul.f32 %v506_v29, %v402_v32  ;;  %v451_v35 = vpop.f32.mrf.mxu1  ;;  %v522_v29 = vunpack.c.l.bf16 %v495_v27 }
  0xc4   : > { %v539_v37 = vmul.f32 %v507_v31, %v451_v35  ;;  %v523_v31 = vunpack.c.h.bf16 %v495_v27 }
  0xc5   : > { %v566_v38 = vpack.c.bf16 %v538_v34, %v536_v33 }
  0xc6   : > { %v567_v39 = vpack.c.bf16 %v539_v37, %v537_v36 }
  0xc7   : > { %721 = vmatmul.bf16.gmra.mxu2 %v566_v38 }
  0xc8   : > { %770 = vmatmul.bf16.gmra.mxu3 %v567_v39 }
  0xca   : > { %v405_v40 = vpop.f32.mrf.mxu0 }
  0xcb   : > { %v454_v41 = vpop.f32.mrf.mxu1  ;;  %v540_v49 = vmul.f32 %v508_v44, %v405_v40  ;;  %v524_v44 = vunpack.c.l.bf16 %v496_v42 }
  0xcc   : > { %v541_v52 = vmul.f32 %v509_v46, %v454_v41  ;;  %v525_v46 = vunpack.c.h.bf16 %v496_v42 }
  0xd2   : > { %v407_v48 = vpop.f32.mrf.mxu0 }
  0xd3   : > { %v542_v50 = vmul.f32 %v510_v45, %v407_v48  ;;  %v456_v51 = vpop.f32.mrf.mxu1  ;;  %v526_v45 = vunpack.c.l.bf16 %v497_v43 }
  0xd4   : > { %v543_v53 = vmul.f32 %v511_v47, %v456_v51  ;;  %v527_v47 = vunpack.c.h.bf16 %v497_v43 }
  0xd5   : > { %v568_v54 = vpack.c.bf16 %v542_v50, %v540_v49 }
  0xd6   : > { %v569_v55 = vpack.c.bf16 %v543_v53, %v541_v52 }
  0xd7   : > { %726 = vmatmul.bf16.gmra.mxu2 %v568_v54 }
  0xd8   : > { %775 = vmatmul.bf16.gmra.mxu3 %v569_v55 }
  0xda   : > { %v410_v56 = vpop.f32.mrf.mxu0 }
  0xdb   : > { %v459_v57 = vpop.f32.mrf.mxu1  ;;  %v544_v1 = vmul.f32 %v512_v60, %v410_v56  ;;  %v528_v60 = vunpack.c.l.bf16 %v498_v58 }
  0xdc   : > { %v545_v4 = vmul.f32 %v513_v62, %v459_v57  ;;  %v529_v62 = vunpack.c.h.bf16 %v498_v58 }
  0xe2   : > { %v412_v0 = vpop.f32.mrf.mxu0 }
  0xe3   : > { %v546_v2 = vmul.f32 %v514_v61, %v412_v0  ;;  %v461_v3 = vpop.f32.mrf.mxu1  ;;  %v530_v61 = vunpack.c.l.bf16 %v499_v59 }
  0xe4   : > { %v547_v5 = vmul.f32 %v515_v63, %v461_v3  ;;  %v531_v63 = vunpack.c.h.bf16 %v499_v59 }
  0xe5   : > { %v570_v6 = vpack.c.bf16 %v546_v2, %v544_v1 }
  0xe6   : > { %v571_v7 = vpack.c.bf16 %v547_v5, %v545_v4 }
  0xe7   : > { %731 = vmatmul.bf16.gmra.mxu2 %v570_v6 }
  0xe8   : > { %780 = vmatmul.bf16.gmra.mxu3 %v571_v7 }
  0xea   : > { %v415_v8 = vpop.f32.mrf.mxu0 }
  0xeb   : > { %v464_v9 = vpop.f32.mrf.mxu1  ;;  %v548_v17 = vmul.f32 %v516_v12, %v415_v8 }
  0xec   : > { %v549_v20 = vmul.f32 %v517_v14, %v464_v9 }
  0xf2   : > { %v417_v16 = vpop.f32.mrf.mxu0 }
  0xf3   : > { %v550_v18 = vmul.f32 %v518_v13, %v417_v16  ;;  %v466_v19 = vpop.f32.mrf.mxu1 }
  0xf4   : > { %v551_v21 = vmul.f32 %v519_v15, %v466_v19 }
  0xf5   : > { %v572_v22 = vpack.c.bf16 %v550_v18, %v548_v17 }
  0xf6   : > { %v573_v23 = vpack.c.bf16 %v551_v21, %v549_v20 }
  0xf7   : > { %736 = vmatmul.bf16.gmra.mxu2 %v572_v22 }
  0xf8   : > { %785 = vmatmul.bf16.gmra.mxu3 %v573_v23 }
  0xfa   : > { %v420_v24 = vpop.f32.mrf.mxu0 }
  0xfb   : > { %v469_v25 = vpop.f32.mrf.mxu1  ;;  %v552_v33 = vmul.f32 %v520_v28, %v420_v24 }
  0xfc   : > { %v553_v36 = vmul.f32 %v521_v30, %v469_v25 }
 0x102   : > { %v422_v32 = vpop.f32.mrf.mxu0 }
 0x103   : > { %v554_v34 = vmul.f32 %v522_v29, %v422_v32  ;;  %v471_v35 = vpop.f32.mrf.mxu1 }
 0x104   : > { %v555_v37 = vmul.f32 %v523_v31, %v471_v35 }
 0x105   : > { %v574_v38 = vpack.c.bf16 %v554_v34, %v552_v33 }
 0x106   : > { %v575_v39 = vpack.c.bf16 %v555_v37, %v553_v36 }
 0x107   : > { %741 = vmatmul.bf16.gmra.mxu2 %v574_v38 }
 0x108   : > { %790 = vmatmul.bf16.gmra.mxu3 %v575_v39 }
 0x10a   : > { %v425_v40 = vpop.f32.mrf.mxu0 }
 0x10b   : > { %v474_v41 = vpop.f32.mrf.mxu1  ;;  %v556_v49 = vmul.f32 %v524_v44, %v425_v40 }
 0x10c   : > { %v557_v52 = vmul.f32 %v525_v46, %v474_v41 }
 0x112   : > { %v427_v48 = vpop.f32.mrf.mxu0 }
 0x113   : > { %v558_v50 = vmul.f32 %v526_v45, %v427_v48  ;;  %v476_v51 = vpop.f32.mrf.mxu1 }
 0x114   : > { %v559_v53 = vmul.f32 %v527_v47, %v476_v51 }
 0x115   : > { %v576_v54 = vpack.c.bf16 %v558_v50, %v556_v49 }
 0x116   : > { %v577_v55 = vpack.c.bf16 %v559_v53, %v557_v52 }
 0x117   : > { %746 = vmatmul.bf16.gmra.mxu2 %v576_v54 }
 0x118   : > { %795 = vmatmul.bf16.gmra.mxu3 %v577_v55 }
 0x11a   : > { %v430_v56 = vpop.f32.mrf.mxu0 }
 0x11b   : > { %v479_v57 = vpop.f32.mrf.mxu1  ;;  %v560_v1 = vmul.f32 %v528_v60, %v430_v56 }
 0x11c   : > { %v561_v4 = vmul.f32 %v529_v62, %v479_v57 }
 0x122   : > { %v432_v0 = vpop.f32.mrf.mxu0 }
 0x123   : > { %v562_v2 = vmul.f32 %v530_v61, %v432_v0  ;;  %v481_v3 = vpop.f32.mrf.mxu1 }
 0x124   : > { %v563_v5 = vmul.f32 %v531_v63, %v481_v3 }
 0x125   : > { %v578_v6 = vpack.c.bf16 %v562_v2, %v560_v1 }
 0x126   : > { %v579_v7 = vpack.c.bf16 %v563_v5, %v561_v4 }
 0x127   : > { %751 = vmatmul.bf16.gmra.mxu2 %v578_v6 }
 0x128   : > { %800 = vmatmul.bf16.gmra.mxu3 %v579_v7 }
 0x13a   : > { %v717_v8 = vpop.f32.mrf.mxu2 }
 0x13b   : > { %v766_v9 = vpop.f32.mrf.mxu3 }
 0x13c   : > { %v767_v10 = vadd.f32 %v766_v9, %v717_v8 }
 0x13e   : > { %806 = vst [vmem:[%s1345_s27] sm:$0xff] %v767_v10 }
 0x142   : > { %v719_v11 = vpop.f32.mrf.mxu2 }
 0x143   : > { %v768_v12 = vpop.f32.mrf.mxu3 }
 0x144   : > { %v769_v13 = vadd.f32 %v768_v12, %v719_v11 }
 0x146   : > { %807 = vst [vmem:[%s1345_s27 + $0x8] sm:$0xff] %v769_v13 }
 0x14a   : > { %v722_v14 = vpop.f32.mrf.mxu2 }
 0x14b   : > { %v771_v15 = vpop.f32.mrf.mxu3 }
 0x14c   : > { %v772_v16 = vadd.f32 %v771_v15, %v722_v14 }
 0x14e   : > { %808 = vst [vmem:[%s1345_s27 + $0x10] sm:$0xff] %v772_v16 }
 0x152   : > { %v724_v17 = vpop.f32.mrf.mxu2 }
 0x153   : > { %v773_v18 = vpop.f32.mrf.mxu3 }
 0x154   : > { %v774_v19 = vadd.f32 %v773_v18, %v724_v17 }
 0x156   : > { %809 = vst [vmem:[%s1345_s27 + $0x18] sm:$0xff] %v774_v19 }
 0x15a   : > { %v727_v20 = vpop.f32.mrf.mxu2 }
 0x15b   : > { %v776_v21 = vpop.f32.mrf.mxu3 }
 0x15c   : > { %v777_v22 = vadd.f32 %v776_v21, %v727_v20 }
 0x15e   : > { %810 = vst [vmem:[%s1345_s27 + $0x20] sm:$0xff] %v777_v22 }
 0x162   : > { %v729_v23 = vpop.f32.mrf.mxu2 }
 0x163   : > { %v778_v24 = vpop.f32.mrf.mxu3 }
 0x164   : > { %v779_v25 = vadd.f32 %v778_v24, %v729_v23 }
 0x166   : > { %811 = vst [vmem:[%s1345_s27 + $0x28] sm:$0xff] %v779_v25 }
 0x16a   : > { %v732_v26 = vpop.f32.mrf.mxu2 }
 0x16b   : > { %v781_v27 = vpop.f32.mrf.mxu3 }
 0x16c   : > { %v782_v28 = vadd.f32 %v781_v27, %v732_v26 }
 0x16e   : > { %812 = vst [vmem:[%s1345_s27 + $0x30] sm:$0xff] %v782_v28 }
 0x172   : > { %v734_v29 = vpop.f32.mrf.mxu2 }
 0x173   : > { %v783_v30 = vpop.f32.mrf.mxu3 }
 0x174   : > { %v784_v31 = vadd.f32 %v783_v30, %v734_v29 }
 0x176   : > { %813 = vst [vmem:[%s1345_s27 + $0x38] sm:$0xff] %v784_v31 }
 0x17a   : > { %v737_v32 = vpop.f32.mrf.mxu2 }
 0x17b   : > { %v786_v33 = vpop.f32.mrf.mxu3 }
 0x17c   : > { %v787_v34 = vadd.f32 %v786_v33, %v737_v32 }
 0x17e   : > { %814 = vst [vmem:[%s1345_s27 + $0x40] sm:$0xff] %v787_v34 }
 0x182   : > { %v739_v35 = vpop.f32.mrf.mxu2 }
 0x183   : > { %v788_v36 = vpop.f32.mrf.mxu3 }
 0x184   : > { %v789_v37 = vadd.f32 %v788_v36, %v739_v35 }
 0x186   : > { %815 = vst [vmem:[%s1345_s27 + $0x48] sm:$0xff] %v789_v37 }
 0x18a   : > { %v742_v38 = vpop.f32.mrf.mxu2 }
 0x18b   : > { %v791_v39 = vpop.f32.mrf.mxu3 }
 0x18c   : > { %v792_v40 = vadd.f32 %v791_v39, %v742_v38 }
 0x18e   : > { %816 = vst [vmem:[%s1345_s27 + $0x50] sm:$0xff] %v792_v40 }
 0x192   : > { %v744_v41 = vpop.f32.mrf.mxu2 }
 0x193   : > { %v793_v42 = vpop.f32.mrf.mxu3 }
 0x194   : > { %v794_v43 = vadd.f32 %v793_v42, %v744_v41 }
 0x196   : > { %817 = vst [vmem:[%s1345_s27 + $0x58] sm:$0xff] %v794_v43 }
 0x19a   : > { %v747_v44 = vpop.f32.mrf.mxu2 }
 0x19b   : > { %v796_v45 = vpop.f32.mrf.mxu3 }
 0x19c   : > { %v797_v46 = vadd.f32 %v796_v45, %v747_v44 }
 0x19e   : > { %818 = vst [vmem:[%s1345_s27 + $0x60] sm:$0xff] %v797_v46 }
 0x1a2   : > { %v749_v47 = vpop.f32.mrf.mxu2 }
 0x1a3   : > { %v798_v48 = vpop.f32.mrf.mxu3 }
 0x1a4   : > { %v799_v49 = vadd.f32 %v798_v48, %v749_v47 }
 0x1a6   : > { %819 = vst [vmem:[%s1345_s27 + $0x68] sm:$0xff] %v799_v49 }
 0x1aa   : > { %v752_v50 = vpop.f32.mrf.mxu2 }
 0x1ab   : > { %v801_v51 = vpop.f32.mrf.mxu3 }
 0x1ac   : > { %v802_v52 = vadd.f32 %v801_v51, %v752_v50 }
 0x1ae   : > { %820 = vst [vmem:[%s1345_s27 + $0x70] sm:$0xff] %v802_v52 }
 0x1b2   : > { %v754_v53 = vpop.f32.mrf.mxu2 }
 0x1b3   : > { %v803_v54 = vpop.f32.mrf.mxu3 }
 0x1b4   : > { %v804_v55 = vadd.f32 %v803_v54, %v754_v53 }
 0x1b6   : > { %821 = vst [vmem:[%s1345_s27 + $0x78] sm:$0xff] %v804_v55 }
 0x1b7 PF: > { %s14_s15 = sadd.s32 1, %s1119_s15  }
 0x1b8   : > { %p11_p4 = scmp.ge.s32.totalorder %s14_s15, 4  }
 0x1ba   :  { %13 = sbr.rel (!%p11_p4) target bundleno = 1 (0x1), region = 69 }

// kernel: teecnet_forward_pallas.21
= control target key start
LH: loop header
LB: loop body
LE: loop exit
PB: predicated region body
PF: predicated region fallthrough
CT: control target
= control target key end

     0   :  { %s383_s1 = inlined_call_operand.vmem [shape: bf16[128,128], index: 1, kind: input, shape index: {}]   ;;  %s384_s2 = inlined_call_operand.vmem [shape: f32[1,128], index: 2, kind: input, shape index: {}]   ;;  %s385_s0 = inlined_call_operand.vmem [shape: f32[128,128], index: 0, kind: input, shape index: {}]   ;;  %s386_s3 = inlined_call_operand.vmem [shape: f32[128,128], index: 3, kind: output, shape index: {}]  }
   0x1   :  { %v214_v0 = vld [vmem:[%s383_s1 + $0x38] sm:$0xff]  ;;  %v213_v1 = vld [vmem:[%s383_s1 + $0x30] sm:$0xff]  ;;  %v212_v2 = vld [vmem:[%s383_s1 + $0x28] sm:$0xff] }
   0x2   :  { %106 = vmatpush.bf16.msra.mxu0 %v214_v0  ;;  %215 = vmatpush.bf16.msra.mxu1 %v214_v0  ;;  %v211_v3 = vld [vmem:[%s383_s1 + $0x20] sm:$0xff]  ;;  %v210_v4 = vld [vmem:[%s383_s1 + $0x18] sm:$0xff]  ;;  %v209_v5 = vld [vmem:[%s383_s1 + $0x10] sm:$0xff] }
   0x3   :  { %216 = vmatpush.bf16.msra.mxu2 %v214_v0  ;;  %217 = vmatpush.bf16.msra.mxu3 %v214_v0  ;;  %v208_v6 = vld [vmem:[%s383_s1 + $0x8] sm:$0xff]  ;;  %v207_v7 = vld [vmem:[%s383_s1] sm:$0xff]  ;;  %v16_v20 = vld [vmem:[%s385_s0 + $0x10] sm:$0xff] }
   0x4   :  { %v14_v8 = vld [vmem:[%s385_s0] sm:$0xff]  ;;  %v15_v9 = vld [vmem:[%s385_s0 + $0x8] sm:$0xff]  ;;  %v17_v21 = vld [vmem:[%s385_s0 + $0x18] sm:$0xff] }
   0x5   :  { %v18_v10 = vld [vmem:[%s385_s0 + $0x20] sm:$0xff]  ;;  %v19_v11 = vld [vmem:[%s385_s0 + $0x28] sm:$0xff]  ;;  %v30_v16 = vpack.c.bf16 %v15_v9, %v14_v8  ;;  %v20_v22 = vld [vmem:[%s385_s0 + $0x30] sm:$0xff]  ;;  %v31_v28 = vpack.c.bf16 %v17_v21, %v16_v20 }
   0x6   :  { %107 = vmatpush.bf16.msra.mxu0 %v213_v1  ;;  %218 = vmatpush.bf16.msra.mxu1 %v213_v1  ;;  %v22_v12 = vld [vmem:[%s385_s0 + $0x40] sm:$0xff]  ;;  %v23_v13 = vld [vmem:[%s385_s0 + $0x48] sm:$0xff]  ;;  %v32_v17 = vpack.c.bf16 %v19_v11, %v18_v10  ;;  %v21_v23 = vld [vmem:[%s385_s0 + $0x38] sm:$0xff] }
   0x7   :  { %219 = vmatpush.bf16.msra.mxu2 %v213_v1  ;;  %220 = vmatpush.bf16.msra.mxu3 %v213_v1  ;;  %v26_v14 = vld [vmem:[%s385_s0 + $0x60] sm:$0xff]  ;;  %v27_v15 = vld [vmem:[%s385_s0 + $0x68] sm:$0xff]  ;;  %v34_v18 = vpack.c.bf16 %v23_v13, %v22_v12  ;;  %v24_v24 = vld [vmem:[%s385_s0 + $0x50] sm:$0xff]  ;;  %v33_v29 = vpack.c.bf16 %v21_v23, %v20_v22 }
   0x8   :  { %v36_v19 = vpack.c.bf16 %v27_v15, %v26_v14  ;;  %v25_v25 = vld [vmem:[%s385_s0 + $0x58] sm:$0xff]  ;;  %v28_v26 = vld [vmem:[%s385_s0 + $0x70] sm:$0xff]  ;;  %v239_v32 = vld [vmem:[%s384_s2] ss:$0 sm:$0xff] }
   0x9   :  { %v29_v27 = vld [vmem:[%s385_s0 + $0x78] sm:$0xff]  ;;  %v35_v30 = vpack.c.bf16 %v25_v25, %v24_v24 }
   0xa   :  { %108 = vmatpush.bf16.msra.mxu0 %v212_v2  ;;  %221 = vmatpush.bf16.msra.mxu1 %v212_v2  ;;  %v37_v31 = vpack.c.bf16 %v29_v27, %v28_v26 }
   0xb   :  { %222 = vmatpush.bf16.msra.mxu2 %v212_v2  ;;  %223 = vmatpush.bf16.msra.mxu3 %v212_v2 }
   0xe   :  { %109 = vmatpush.bf16.msra.mxu0 %v211_v3  ;;  %224 = vmatpush.bf16.msra.mxu1 %v211_v3 }
   0xf   :  { %225 = vmatpush.bf16.msra.mxu2 %v211_v3  ;;  %226 = vmatpush.bf16.msra.mxu3 %v211_v3 }
  0x12   :  { %110 = vmatpush.bf16.msra.mxu0 %v210_v4  ;;  %227 = vmatpush.bf16.msra.mxu1 %v210_v4 }
  0x13   :  { %228 = vmatpush.bf16.msra.mxu2 %v210_v4  ;;  %229 = vmatpush.bf16.msra.mxu3 %v210_v4 }
  0x16   :  { %111 = vmatpush.bf16.msra.mxu0 %v209_v5  ;;  %230 = vmatpush.bf16.msra.mxu1 %v209_v5 }
  0x17   :  { %231 = vmatpush.bf16.msra.mxu2 %v209_v5  ;;  %232 = vmatpush.bf16.msra.mxu3 %v209_v5 }
  0x1a   :  { %112 = vmatpush.bf16.msra.mxu0 %v208_v6  ;;  %233 = vmatpush.bf16.msra.mxu1 %v208_v6 }
  0x1b   :  { %234 = vmatpush.bf16.msra.mxu2 %v208_v6  ;;  %235 = vmatpush.bf16.msra.mxu3 %v208_v6 }
  0x1e   :  { %113 = vmatpush.bf16.msra.mxu0 %v207_v7  ;;  %236 = vmatpush.bf16.msra.mxu1 %v207_v7 }
  0x1f   :  { %237 = vmatpush.bf16.msra.mxu2 %v207_v7  ;;  %238 = vmatpush.bf16.msra.mxu3 %v207_v7 }
  0x21   :  { %114 = vmatmul.bf16.vlgmr.msra.gmra.mxu0 %v30_v16  ;;  %124 = vmatmul.bf16.vlgmr.msra.gmra.mxu1 %v32_v17 }
  0x22   :  { %134 = vmatmul.bf16.vlgmr.msra.gmra.mxu2 %v34_v18  ;;  %144 = vmatmul.bf16.vlgmr.msra.gmra.mxu3 %v36_v19 }
  0x31   :  { %119 = vmatmul.bf16.gmra.mxu0 %v31_v28  ;;  %129 = vmatmul.bf16.gmra.mxu1 %v33_v29 }
  0x32   :  { %139 = vmatmul.bf16.gmra.mxu2 %v35_v30  ;;  %149 = vmatmul.bf16.gmra.mxu3 %v37_v31 }
  0x9e   :  { %v115_v33 = vpop.f32.mrf.mxu0  ;;  %v125_v34 = vpop.f32.mrf.mxu1 }
  0x9f   :  { %v116_v35 = vadd.f32 %v239_v32, %v115_v33  ;;  %v126_v36 = vadd.f32 %v239_v32, %v125_v34 }
  0xa1   :  { %155 = vst [vmem:[%s386_s3] sm:$0xff] %v116_v35 }
  0xa2   :  { %159 = vst [vmem:[%s386_s3 + $0x20] sm:$0xff] %v126_v36 }
  0xa5   :  { %v135_v37 = vpop.f32.mrf.mxu2  ;;  %v145_v38 = vpop.f32.mrf.mxu3 }
  0xa6   :  { %v136_v39 = vadd.f32 %v239_v32, %v135_v37  ;;  %v146_v40 = vadd.f32 %v239_v32, %v145_v38  ;;  %v117_v41 = vpop.f32.mrf.mxu0  ;;  %v127_v42 = vpop.f32.mrf.mxu1 }
  0xa7   :  { %v118_v43 = vadd.f32 %v239_v32, %v117_v41  ;;  %v128_v44 = vadd.f32 %v239_v32, %v127_v42 }
  0xa8   :  { %163 = vst [vmem:[%s386_s3 + $0x40] sm:$0xff] %v136_v39 }
  0xa9   :  { %167 = vst [vmem:[%s386_s3 + $0x60] sm:$0xff] %v146_v40 }
  0xaa   :  { %156 = vst [vmem:[%s386_s3 + $0x8] sm:$0xff] %v118_v43 }
  0xab   :  { %160 = vst [vmem:[%s386_s3 + $0x28] sm:$0xff] %v128_v44 }
  0xad   :  { %v137_v45 = vpop.f32.mrf.mxu2  ;;  %v147_v46 = vpop.f32.mrf.mxu3 }
  0xae   :  { %v138_v47 = vadd.f32 %v239_v32, %v137_v45  ;;  %v148_v48 = vadd.f32 %v239_v32, %v147_v46  ;;  %v120_v49 = vpop.f32.mrf.mxu0  ;;  %v130_v50 = vpop.f32.mrf.mxu1 }
  0xaf   :  { %v121_v51 = vadd.f32 %v239_v32, %v120_v49  ;;  %v131_v52 = vadd.f32 %v239_v32, %v130_v50 }
  0xb0   :  { %164 = vst [vmem:[%s386_s3 + $0x48] sm:$0xff] %v138_v47 }
  0xb1   :  { %168 = vst [vmem:[%s386_s3 + $0x68] sm:$0xff] %v148_v48 }
  0xb2   :  { %157 = vst [vmem:[%s386_s3 + $0x10] sm:$0xff] %v121_v51 }
  0xb3   :  { %161 = vst [vmem:[%s386_s3 + $0x30] sm:$0xff] %v131_v52 }
  0xb5   :  { %v140_v53 = vpop.f32.mrf.mxu2  ;;  %v150_v54 = vpop.f32.mrf.mxu3 }
  0xb6   :  { %v141_v55 = vadd.f32 %v239_v32, %v140_v53  ;;  %v151_v56 = vadd.f32 %v239_v32, %v150_v54  ;;  %v122_v57 = vpop.f32.mrf.mxu0  ;;  %v132_v58 = vpop.f32.mrf.mxu1 }
  0xb7   :  { %v123_v59 = vadd.f32 %v239_v32, %v122_v57  ;;  %v133_v60 = vadd.f32 %v239_v32, %v132_v58 }
  0xb8   :  { %165 = vst [vmem:[%s386_s3 + $0x50] sm:$0xff] %v141_v55 }
  0xb9   :  { %169 = vst [vmem:[%s386_s3 + $0x70] sm:$0xff] %v151_v56 }
  0xba   :  { %158 = vst [vmem:[%s386_s3 + $0x18] sm:$0xff] %v123_v59 }
  0xbb   :  { %162 = vst [vmem:[%s386_s3 + $0x38] sm:$0xff] %v133_v60 }
  0xbd   :  { %v142_v61 = vpop.f32.mrf.mxu2  ;;  %v152_v62 = vpop.f32.mrf.mxu3 }
  0xbe   :  { %v143_v63 = vadd.f32 %v239_v32, %v142_v61  ;;  %v153_v0 = vadd.f32 %v239_v32, %v152_v62 }
  0xc0   :  { %166 = vst [vmem:[%s386_s3 + $0x58] sm:$0xff] %v143_v63 }
  0xc1   :  { %170 = vst [vmem:[%s386_s3 + $0x78] sm:$0xff] %v153_v0 }

</bundles_post_ra>
